<compile_context>
chip_gen: v7x
topology: tpu7x:2x2x1
jax: 0.10.0
libtpu: 0.0.40
codegen_flags: <defaults>
</compile_context>

<pallas_src>
import math

import jax
import jax.numpy as jnp
import numpy as np
from jax import lax
from jax.experimental import pallas as pl
from jax.experimental.pallas import tpu as pltpu

# Small, module-consistent sizes.
N = 64   # len(all_values)  == vocab size of the frozen embedding table
D = 32   # output_size      == embedding dim
B = 8    # number of query values passed to forward()


def log_scale_host(x):
    """Plain-JAX mirror of log_scaling_function (init-time a/b + reference)."""
    y = jnp.where(x > 1.0, jnp.log(x) + 1.0, x)
    y = jnp.where(x < -1.0, -jnp.log(-x) - 1.0, y)
    return y


# ---------------------------------------------------------------------------
# Init-time kernel: build the frozen DICE embedding table (runs once).
# ---------------------------------------------------------------------------
def dice_table_kernel(ab_ref, x_ref, q_ref, table_ref):
    # ab_ref   : SMEM (2,)   f32 -- [a, b] = scaled min / max of train values
    # x_ref    : VMEM (N, 1) f32 -- all_values as a column
    # q_ref    : VMEM (D, D) f32 -- orthogonal Q from QR(randn(D, D))
    # table_ref: VMEM (N, D) f32 -- output: the DICE embedding table (E @ Q)
    x = x_ref[...]                                       # (N, 1)
    a = ab_ref[0]
    b = ab_ref[1]

    # log_scaling_function (unselected branch results are unused)
    xs = jnp.where(x > 1.0, jnp.log(x) + 1.0, x)
    xs = jnp.where(x < -1.0, -jnp.log(-x) - 1.0, xs)

    theta = (xs - a) / (b - a) * jnp.float32(math.pi)    # (N, 1)
    sin_t = jnp.sin(theta)
    cos_t = jnp.cos(theta)

    # Integer exponent per output column: d for d < D-1, D for the last one.
    col = lax.broadcasted_iota(jnp.int32, (N, D), 1)
    expn = jnp.where(col < (D - 1), col, D)              # values in {0..D-2, D}

    # sin^expn via binary exponentiation: pure VPU multiplies/selects.
    powm = jnp.ones((N, D), jnp.float32)
    s_pow = sin_t                                        # (N, 1): sin^(2^k)
    for k in range(D.bit_length()):                      # max exponent is D
        bit = (expn >> k) & 1
        powm = jnp.where(bit == 1, powm * s_pow, powm)
        s_pow = s_pow * s_pow

    # Columns 0..D-2: sin^d * cos ; last column: sin^D.
    E = jnp.where(col < (D - 1), powm * cos_t, powm)     # (N, D)

    # table = E @ Q on the MXU.
    table_ref[...] = jnp.dot(E, q_ref[...], preferred_element_type=jnp.float32)


def build_dice_table(ab, values_col, Q):
    return pl.pallas_call(
        dice_table_kernel,
        out_shape=jax.ShapeDtypeStruct((N, D), jnp.float32),
        in_specs=[
            pl.BlockSpec(memory_space=pltpu.MemorySpace.SMEM),   # [a, b]
            pl.BlockSpec(memory_space=pltpu.MemorySpace.VMEM),   # all_values
            pl.BlockSpec(memory_space=pltpu.MemorySpace.VMEM),   # Q
        ],
        out_specs=pl.BlockSpec(memory_space=pltpu.MemorySpace.VMEM),
    )(ab, values_col, Q)


# ---------------------------------------------------------------------------
# forward(): embedding lookup of the queried ids (one-hot MXU gather).
# ---------------------------------------------------------------------------
def dice_forward_kernel(ids_ref, table_ref, out_ref):
    # ids_ref  : VMEM (B, 1) int32 -- vocab ids of the queried values
    # table_ref: VMEM (N, D) f32   -- frozen DICE embedding table
    # out_ref  : VMEM (B, D) f32   -- gathered embeddings
    ids = ids_ref[...]                                   # (B, 1)
    col = lax.broadcasted_iota(jnp.int32, (B, N), 1)
    onehot = (col == ids).astype(jnp.float32)            # (B, N)
    # One (B,N)x(N,D) vmatmul replaces B serialized dynamic row loads/stores.
    out_ref[...] = jnp.dot(onehot, table_ref[...],
                           preferred_element_type=jnp.float32)


def dice_forward(ids_col, table):
    return pl.pallas_call(
        dice_forward_kernel,
        out_shape=jax.ShapeDtypeStruct((B, D), jnp.float32),
        in_specs=[
            pl.BlockSpec(memory_space=pltpu.MemorySpace.VMEM),   # ids
            pl.BlockSpec(memory_space=pltpu.MemorySpace.VMEM),   # table
        ],
        out_specs=pl.BlockSpec(memory_space=pltpu.MemorySpace.VMEM),
    )(ids_col, table)


# ---------------------------------------------------------------------------
# Pure-JAX reference (mirrors the PyTorch __init__ + forward).
# ---------------------------------------------------------------------------
def dice_reference(values, Q, a, b, ids):
    xs = log_scale_host(values)
    theta = (xs - a) / (b - a) * jnp.float32(math.pi)
    sin_t, cos_t = jnp.sin(theta), jnp.cos(theta)
    d = jnp.arange(0, D - 1, dtype=jnp.float32)
    w = jnp.concatenate(
        [jnp.power(sin_t[:, None], d[None, :]) * cos_t[:, None],
         jnp.power(sin_t, jnp.float32(D))[:, None]],
        axis=1)
    table = jnp.dot(w, Q, precision=lax.Precision.HIGHEST)
    return table[ids]


# TODO(synk): only scaler='log' is implemented; the 'quantile' scaler
# (QuantileScaling) path of the module is not translated.

if __name__ == "__main__":
    key = jax.random.PRNGKey(0)

    # Deterministic parameter init (stands in for torch.randn + torch.linalg.qr).
    M = jax.random.normal(key, (D, D), dtype=jnp.float32)
    Q, _ = jnp.linalg.qr(M)
    Q = Q.astype(jnp.float32)

    # all_values == train_values: a small deterministic, sorted vocabulary.
    all_values = jnp.linspace(-100.0, 100.0, N).astype(jnp.float32)

    # a, b = scaled min/max of the sorted train values (module __init__ glue).
    scaled_sorted = log_scale_host(jnp.sort(all_values))
    ab = jnp.stack([scaled_sorted[0], scaled_sorted[-1]]).astype(jnp.float32)

    values_col = all_values.reshape(N, 1)

    # __init__: build the frozen embedding table once (Pallas kernel).
    table = jax.block_until_ready(build_dice_table(ab, values_col, Q))

    # forward(x): query values -> ids via value_vocab.  The vocab here is the
    # linspace above, so ids are just chosen indices.
    ids = jnp.array([3, 10, 0, 63, 31, 7, 45, 22], dtype=jnp.int32)
    ids_col = ids.reshape(B, 1)

    out = jax.block_until_ready(dice_forward(ids_col, table))

    ref = jax.block_until_ready(dice_reference(all_values, Q, ab[0], ab[1], ids))

    assert out.shape == (B, D) and out.dtype == jnp.float32
    assert np.all(np.isfinite(np.asarray(out)))
    # Loose tolerance: MXU f32 matmul precision vs XLA HIGHEST reference.
    assert np.allclose(np.asarray(out), np.asarray(ref), rtol=5e-2, atol=5e-2), \
        f"max abs diff = {np.max(np.abs(np.asarray(out) - np.asarray(ref)))}"

    print("KERNEL_OK")
</pallas_src>

<mosaic_0001>
module attributes {stable_mosaic.version = 11 : i64} {
  func.func @dice_table_kernel(%arg0: memref<2xf32, #tpu.memory_space<smem>>, %arg1: memref<64x1xf32, #tpu.memory_space<vmem>>, %arg2: memref<32x32xf32, #tpu.memory_space<vmem>>, %arg3: memref<64x32xf32, #tpu.memory_space<vmem>>) attributes {dimension_semantics = [], scalar_prefetch = 0 : i64, scratch_operands = 0 : i64, tpu.core_type = #tpu.core_type<tc>} {
    %c0 = arith.constant 0 : index
    %c0_0 = arith.constant 0 : index
    %0 = vector.load %arg1[%c0, %c0_0] : memref<64x1xf32, #tpu.memory_space<vmem>>, vector<64x1xf32>
    %c0_1 = arith.constant 0 : index
    %1 = memref.load %arg0[%c0_1] : memref<2xf32, #tpu.memory_space<smem>>
    %c1 = arith.constant 1 : index
    %2 = memref.load %arg0[%c1] : memref<2xf32, #tpu.memory_space<smem>>
    %cst = arith.constant 1.000000e+00 : f32
    %3 = vector.broadcast %cst : f32 to vector<64x1xf32>
    %4 = arith.cmpf ogt, %0, %3 : vector<64x1xf32>
    %5 = math.log %0 : vector<64x1xf32>
    %cst_2 = arith.constant 1.000000e+00 : f32
    %6 = vector.broadcast %cst_2 : f32 to vector<64x1xf32>
    %7 = arith.addf %5, %6 : vector<64x1xf32>
    %8 = arith.select %4, %7, %0 : vector<64x1xi1>, vector<64x1xf32>
    %cst_3 = arith.constant -1.000000e+00 : f32
    %9 = vector.broadcast %cst_3 : f32 to vector<64x1xf32>
    %10 = arith.cmpf olt, %0, %9 : vector<64x1xf32>
    %cst_4 = arith.constant 0.000000e+00 : f32
    %11 = vector.broadcast %cst_4 : f32 to vector<64x1xf32>
    %12 = arith.subf %11, %0 : vector<64x1xf32>
    %13 = math.log %12 : vector<64x1xf32>
    %cst_5 = arith.constant 0.000000e+00 : f32
    %14 = vector.broadcast %cst_5 : f32 to vector<64x1xf32>
    %15 = arith.subf %14, %13 : vector<64x1xf32>
    %cst_6 = arith.constant 1.000000e+00 : f32
    %16 = vector.broadcast %cst_6 : f32 to vector<64x1xf32>
    %17 = arith.subf %15, %16 : vector<64x1xf32>
    %18 = arith.select %10, %17, %8 : vector<64x1xi1>, vector<64x1xf32>
    %19 = vector.broadcast %1 : f32 to vector<64x1xf32>
    %20 = arith.subf %18, %19 : vector<64x1xf32>
    %21 = arith.subf %2, %1 : f32
    %22 = vector.broadcast %21 : f32 to vector<64x1xf32>
    %23 = arith.divf %20, %22 : vector<64x1xf32>
    %cst_7 = arith.constant 3.14159274 : f32
    %24 = vector.broadcast %cst_7 : f32 to vector<64x1xf32>
    %25 = arith.mulf %23, %24 : vector<64x1xf32>
    %26 = math.sin %25 : vector<64x1xf32>
    %27 = math.cos %25 : vector<64x1xf32>
    %28 = tpu.iota {dimensions = array<i32: 1>} : vector<64x32xi32>
    %c31_i32 = arith.constant 31 : i32
    %29 = vector.broadcast %c31_i32 : i32 to vector<64x32xi32>
    %30 = arith.cmpi slt, %28, %29 : vector<64x32xi32>
    %c32_i32 = arith.constant 32 : i32
    %31 = vector.broadcast %c32_i32 : i32 to vector<64x32xi32>
    %32 = arith.select %30, %28, %31 : vector<64x32xi1>, vector<64x32xi32>
    %cst_8 = arith.constant 1.000000e+00 : f32
    %33 = vector.broadcast %cst_8 : f32 to vector<64x32xf32>
    %c0_i32 = arith.constant 0 : i32
    %34 = vector.broadcast %c0_i32 : i32 to vector<64x32xi32>
    %35 = arith.shrsi %32, %34 : vector<64x32xi32>
    %c1_i32 = arith.constant 1 : i32
    %36 = vector.broadcast %c1_i32 : i32 to vector<64x32xi32>
    %37 = arith.andi %35, %36 : vector<64x32xi32>
    %c1_i32_9 = arith.constant 1 : i32
    %38 = vector.broadcast %c1_i32_9 : i32 to vector<64x32xi32>
    %39 = arith.cmpi eq, %37, %38 : vector<64x32xi32>
    %40 = vector.broadcast %26 : vector<64x1xf32> to vector<64x32xf32>
    %41 = arith.mulf %33, %40 : vector<64x32xf32>
    %42 = arith.select %39, %41, %33 : vector<64x32xi1>, vector<64x32xf32>
    %43 = arith.mulf %26, %26 : vector<64x1xf32>
    %c1_i32_10 = arith.constant 1 : i32
    %44 = vector.broadcast %c1_i32_10 : i32 to vector<64x32xi32>
    %45 = arith.shrsi %32, %44 : vector<64x32xi32>
    %c1_i32_11 = arith.constant 1 : i32
    %46 = vector.broadcast %c1_i32_11 : i32 to vector<64x32xi32>
    %47 = arith.andi %45, %46 : vector<64x32xi32>
    %c1_i32_12 = arith.constant 1 : i32
    %48 = vector.broadcast %c1_i32_12 : i32 to vector<64x32xi32>
    %49 = arith.cmpi eq, %47, %48 : vector<64x32xi32>
    %50 = vector.broadcast %43 : vector<64x1xf32> to vector<64x32xf32>
    %51 = arith.mulf %42, %50 : vector<64x32xf32>
    %52 = arith.select %49, %51, %42 : vector<64x32xi1>, vector<64x32xf32>
    %53 = arith.mulf %43, %43 : vector<64x1xf32>
    %c2_i32 = arith.constant 2 : i32
    %54 = vector.broadcast %c2_i32 : i32 to vector<64x32xi32>
    %55 = arith.shrsi %32, %54 : vector<64x32xi32>
    %c1_i32_13 = arith.constant 1 : i32
    %56 = vector.broadcast %c1_i32_13 : i32 to vector<64x32xi32>
    %57 = arith.andi %55, %56 : vector<64x32xi32>
    %c1_i32_14 = arith.constant 1 : i32
    %58 = vector.broadcast %c1_i32_14 : i32 to vector<64x32xi32>
    %59 = arith.cmpi eq, %57, %58 : vector<64x32xi32>
    %60 = vector.broadcast %53 : vector<64x1xf32> to vector<64x32xf32>
    %61 = arith.mulf %52, %60 : vector<64x32xf32>
    %62 = arith.select %59, %61, %52 : vector<64x32xi1>, vector<64x32xf32>
    %63 = arith.mulf %53, %53 : vector<64x1xf32>
    %c3_i32 = arith.constant 3 : i32
    %64 = vector.broadcast %c3_i32 : i32 to vector<64x32xi32>
    %65 = arith.shrsi %32, %64 : vector<64x32xi32>
    %c1_i32_15 = arith.constant 1 : i32
    %66 = vector.broadcast %c1_i32_15 : i32 to vector<64x32xi32>
    %67 = arith.andi %65, %66 : vector<64x32xi32>
    %c1_i32_16 = arith.constant 1 : i32
    %68 = vector.broadcast %c1_i32_16 : i32 to vector<64x32xi32>
    %69 = arith.cmpi eq, %67, %68 : vector<64x32xi32>
    %70 = vector.broadcast %63 : vector<64x1xf32> to vector<64x32xf32>
    %71 = arith.mulf %62, %70 : vector<64x32xf32>
    %72 = arith.select %69, %71, %62 : vector<64x32xi1>, vector<64x32xf32>
    %73 = arith.mulf %63, %63 : vector<64x1xf32>
    %c4_i32 = arith.constant 4 : i32
    %74 = vector.broadcast %c4_i32 : i32 to vector<64x32xi32>
    %75 = arith.shrsi %32, %74 : vector<64x32xi32>
    %c1_i32_17 = arith.constant 1 : i32
    %76 = vector.broadcast %c1_i32_17 : i32 to vector<64x32xi32>
    %77 = arith.andi %75, %76 : vector<64x32xi32>
    %c1_i32_18 = arith.constant 1 : i32
    %78 = vector.broadcast %c1_i32_18 : i32 to vector<64x32xi32>
    %79 = arith.cmpi eq, %77, %78 : vector<64x32xi32>
    %80 = vector.broadcast %73 : vector<64x1xf32> to vector<64x32xf32>
    %81 = arith.mulf %72, %80 : vector<64x32xf32>
    %82 = arith.select %79, %81, %72 : vector<64x32xi1>, vector<64x32xf32>
    %83 = arith.mulf %73, %73 : vector<64x1xf32>
    %c5_i32 = arith.constant 5 : i32
    %84 = vector.broadcast %c5_i32 : i32 to vector<64x32xi32>
    %85 = arith.shrsi %32, %84 : vector<64x32xi32>
    %c1_i32_19 = arith.constant 1 : i32
    %86 = vector.broadcast %c1_i32_19 : i32 to vector<64x32xi32>
    %87 = arith.andi %85, %86 : vector<64x32xi32>
    %c1_i32_20 = arith.constant 1 : i32
    %88 = vector.broadcast %c1_i32_20 : i32 to vector<64x32xi32>
    %89 = arith.cmpi eq, %87, %88 : vector<64x32xi32>
    %90 = vector.broadcast %83 : vector<64x1xf32> to vector<64x32xf32>
    %91 = arith.mulf %82, %90 : vector<64x32xf32>
    %92 = arith.select %89, %91, %82 : vector<64x32xi1>, vector<64x32xf32>
    %c31_i32_21 = arith.constant 31 : i32
    %93 = vector.broadcast %c31_i32_21 : i32 to vector<64x32xi32>
    %94 = arith.cmpi slt, %28, %93 : vector<64x32xi32>
    %95 = vector.broadcast %27 : vector<64x1xf32> to vector<64x32xf32>
    %96 = arith.mulf %92, %95 : vector<64x32xf32>
    %97 = arith.select %94, %96, %92 : vector<64x32xi1>, vector<64x32xf32>
    %c0_22 = arith.constant 0 : index
    %c0_23 = arith.constant 0 : index
    %98 = vector.load %arg2[%c0_22, %c0_23] : memref<32x32xf32, #tpu.memory_space<vmem>>, vector<32x32xf32>
    %cst_24 = arith.constant dense<0.000000e+00> : vector<64x32xf32>
    %99 = tpu.matmul %97, %98, %cst_24 {dimension_numbers = #tpu.dot_dimension_numbers<[1], [0], [0], [1], [0, 0, 1, 1], [], []>} : vector<64x32xf32>, vector<32x32xf32>, vector<64x32xf32> -> vector<64x32xf32>
    %c0_25 = arith.constant 0 : index
    %c0_26 = arith.constant 0 : index
    %100 = vector.load %arg3[%c0_25, %c0_26] : memref<64x32xf32, #tpu.memory_space<vmem>>, vector<64x32xf32>
    tpu.vector_store %arg3[%c0_25, %c0_26], %99 {strides = array<i32>} : memref<64x32xf32, #tpu.memory_space<vmem>>, vector<64x32xf32>,
    return
  }
}

</mosaic_0001>

<bundles_post_ra>
// kernel: tpu_custom_call.1
= control target key start
LH: loop header
LB: loop body
LE: loop exit
PB: predicated region body
PF: predicated region fallthrough
CT: control target
= control target key end

     0   :  { %8 = vsyncpa [#allocation3], 0  ;;  %s3888_s0 = inlined_call_operand.vmem [shape: f32[2], index: 0, kind: input, shape index: {}]   ;;  %s3889_s1 = inlined_call_operand.vmem [shape: f32[64,1], index: 1, kind: input, shape index: {}]   ;;  %s3890_s2 = inlined_call_operand.vmem [shape: f32[32,32], index: 2, kind: input, shape index: {}]   ;;  %s3891_s3 = inlined_call_operand.vmem [shape: f32[64,32], index: 3, kind: output, shape index: {}]  }
   0x1   :  { %s15_s14 = sshll.u32 %s3888_s0, 4  ;;  %s16_s14 = int_to_ptr.vmem [resolvable:$true] %s15_s14 }
   0x2   :  { %s2642_s15 = scalar_lea.vmem %s16_s14, 16  ;;  %p2647_p1 = scmp.lt.s32.totalorder %s16_s14, %s16_s14 }
   0x3   :  { %p2643_p0 = scmp.ne.s32.totalorder %s16_s14, %s2642_s15  ;;  %p2648_p2 = scmp.lt.s32.totalorder %s2642_s15, %s2642_s15 }
   0x5   :  { %p2649_p3 = por %p2648_p2, %p2647_p1 }
   0x7   :  { %p2650_p4 = pnand %p2649_p3, %p2643_p0 }
   0x9   :  { %2653 = shalt.err (!%p2650_p4)
}
   0xa   :  { %s2656_s16 = smov [#allocation2]  }
   0xb   :  { %18 = dma.vmem_to_smem %s16_s14, 16, %s2656_s16, [#allocation3]  }
   0xc   :  { %2654 = dma.done.wait [#allocation3], 16  }
   0xd   :  { %2655 = vsyncadd [#allocation3], 4294967280 }
   0xe   :  { %26 = sfence }
   0xf   :  { %v28_v0 = vld [vmem:[%s3889_s1 + $0x8] sm:$0xff]  ;;  %s2690_s19 = sld [smem:[#allocation2]]  ;;  %s2409_s0 = sld [smem:[#allocation2 + $0x1]]  ;;  %v2657_v1 = vmov 0   ;;  %v2695_v3 = vld [vmem:[%s3889_s1] sm:$0xff]  ;;  %v2714_v8 = vld [vmem:[%s3889_s1 + $0x30] sm:$0xff] }
  0x10   :  { %2575 = vset.pattern.permute.xlu1 %v2657_v1  ;;  %2574 = vset.pattern.permute.xlu0 %v2657_v1  ;;  %2576 = vlog2.f32 %v28_v0  ;;  %v86_v2 = vsub.f32 0.0, %v28_v0  ;;  %v2701_v4 = vld [vmem:[%s3889_s1 + $0x28] sm:$0xff]  ;;  %v2706_v5 = vld [vmem:[%s3889_s1 + $0x20] sm:$0xff]  ;;  %v85_v6 = vsub.f32 0.0, %v2695_v3  ;;  %v91_v11 = vsub.f32 0.0, %v2714_v8 }
  0x11   :  { %2578 = vlog2.f32 %v2695_v3  ;;  %v90_v7 = vsub.f32 0.0, %v2701_v4  ;;  %v89_v9 = vsub.f32 0.0, %v2706_v5  ;;  %vm38_vm0 = vcmp.gt.f32.partialorder %v28_v0, 1.0 }
  0x12   :  { %2580 = vlog2.f32 %v86_v2  ;;  %vm78_vm1 = vcmp.lt.f32.partialorder %v28_v0, -1.0  ;;  %vm37_vm2 = vcmp.gt.f32.partialorder %v2695_v3, 1.0  ;;  %vm42_vm3 = vcmp.gt.f32.partialorder %v2701_v4, 1.0 }
  0x13   :  { %2582 = vlog2.f32 %v2701_v4  ;;  %vm77_vm4 = vcmp.lt.f32.partialorder %v2695_v3, -1.0  ;;  %vm82_vm5 = vcmp.lt.f32.partialorder %v2701_v4, -1.0  ;;  %vm41_vm6 = vcmp.gt.f32.partialorder %v2706_v5, 1.0 }
  0x14   :  { %2584 = vlog2.f32 %v85_v6  ;;  %vm81_vm7 = vcmp.lt.f32.partialorder %v2706_v5, -1.0  ;;  %vm43_vm8 = vcmp.gt.f32.partialorder %v2714_v8, 1.0  ;;  %vm83_vm9 = vcmp.lt.f32.partialorder %v2714_v8, -1.0 }
  0x15   :  { %s142_s28 = ssub.f32 %s2409_s0, %s2690_s19  ;;  %2586 = vlog2.f32 %v90_v7  ;;  %v2724_v29 = vstv %s2690_s19 }
  0x16   :  { %2588 = vlog2.f32 %v2706_v5 }
  0x17   :  { %v143_v10 = vstv %s142_s28 }
  0x18   :  { %2590 = vrcp.f32 %v143_v10 }
  0x19   :  { %2592 = vlog2.f32 %v89_v9 }
  0x1a   :  { %v2577_v12 = vpop.eup %2576  ;;  %2594 = vlog2.f32 %v2714_v8 }
  0x1b   :  { %v2579_v13 = vpop.eup %2578  ;;  %v48_v14 = vmul.f32 0.6931472, %v2577_v12  ;;  %2596 = vlog2.f32 %v91_v11 }
  0x1c   :  { %v2581_v15 = vpop.eup %2580  ;;  %v46_v16 = vmul.f32 0.6931472, %v2579_v13 }
  0x1d   :  { %v62_v17 = vadd.f32 1.0, %v48_v14  ;;  %v96_v18 = vmul.f32 0.6931472, %v2581_v15  ;;  %v2583_v19 = vpop.eup %2582 }
  0x1e   :  { %v2585_v20 = vpop.eup %2584  ;;  %v61_v22 = vadd.f32 1.0, %v46_v16  ;;  %v56_v23 = vmul.f32 0.6931472, %v2583_v19 }
  0x1f   :  { %v110_v21 = vsub.f32 0.0, %v96_v18  ;;  %v2587_v24 = vpop.eup %2586  ;;  %v70_v25 = vsel %vm38_vm0, %v62_v17, %v28_v0  ;;  %v94_v26 = vmul.f32 0.6931472, %v2585_v20 }
  0x20   :  { %v2589_v27 = vpop.eup %2588  ;;  %v66_v30 = vadd.f32 1.0, %v56_v23  ;;  %v104_v31 = vmul.f32 0.6931472, %v2587_v24  ;;  %v69_v36 = vsel %vm37_vm2, %v61_v22, %v2695_v3 }
  0x21   :  { %v2411_v28 = vadd.f32 -1.0, %v110_v21  ;;  %v109_v33 = vsub.f32 0.0, %v94_v26  ;;  %v54_v45 = vmul.f32 0.6931472, %v2589_v27  ;;  %v2658_v27 = vmov 683565275  }
  0x22   :  { %v2726_v32 = vpop.eup %2590  ;;  %v114_v37 = vsub.f32 0.0, %v104_v31  ;;  %v74_v41 = vsel %vm42_vm3, %v66_v30, %v2701_v4  ;;  %v2659_v30 = vmov 2475754826  }
  0x23   :  { %v2593_v34 = vpop.eup %2592  ;;  %v126_v35 = vsel %vm78_vm1, %v2411_v28, %v70_v25  ;;  %v2410_v40 = vadd.f32 -1.0, %v109_v33  ;;  %v65_v56 = vadd.f32 1.0, %v54_v45  ;;  %v2660_v33 = vmov 2131351028  }
  0x24   :  { %v2595_v38 = vpop.eup %2594  ;;  %v135_v39 = vsub.f32 %v126_v35, %v2724_v29  ;;  %v102_v42 = vmul.f32 0.6931472, %v2593_v34  ;;  %v2415_v44 = vadd.f32 -1.0, %v114_v37  ;;  %v2661_v35 = vmov 2102212464  }
  0x25   :  { %v2597_v43 = vpop.eup %2596  ;;  %v125_v47 = vsel %vm77_vm4, %v2410_v40, %v69_v36  ;;  %v58_v50 = vmul.f32 0.6931472, %v2595_v38  ;;  %v73_v4 = vsel %vm41_vm6, %v65_v56, %v2706_v5  ;;  %v2662_v37 = vmov 920167782  }
  0x26   :  { %v146_v46 = vmul.f32 %v2726_v32, %v135_v39  ;;  %v134_v48 = vsub.f32 %v125_v47, %v2724_v29  ;;  %v130_v49 = vsel %vm82_vm5, %v2415_v44, %v74_v41  ;;  %v113_v53 = vsub.f32 0.0, %v102_v42 }
  0x27   :  { %v139_v52 = vsub.f32 %v130_v49, %v2724_v29  ;;  %v106_v54 = vmul.f32 0.6931472, %v2597_v43  ;;  %v67_v63 = vadd.f32 1.0, %v58_v50  ;;  %v2663_v44 = vmov 1326507024  }
  0x28   :  { %v2740_v51 = vmul.f32 3.1415927, %v146_v46  ;;  %v145_v55 = vmul.f32 %v2726_v32, %v134_v48  ;;  %v2414_v62 = vadd.f32 -1.0, %v113_v53 }
  0x29   :  { %v150_v60 = vmul.f32 %v2726_v32, %v139_v52  ;;  %v115_v0 = vsub.f32 0.0, %v106_v54  ;;  %v75_v13 = vsel %vm43_vm8, %v67_v63, %v2714_v8 }
  0x2a   :  { %v265_v57 = vand.u32 2147483647, %v2740_v51  ;;  %v268_v58 = vand.u32 2139095040, %v2740_v51  ;;  %v2747_v59 = vmul.f32 3.1415927, %v145_v55  ;;  %v2764_v12 = vsel %vm81_vm7, %v2414_v62, %v73_v4 }
  0x2b   :  { %v2757_v7 = vmul.f32 3.1415927, %v150_v60  ;;  %v2416_v14 = vadd.f32 -1.0, %v115_v0  ;;  %v138_v5 = vsub.f32 %v2764_v12, %v2724_v29  ;;  %vm267_vm7 = vcmp.lt.s32.totalorder %v2740_v51, 0 }
  0x2c   :  { %v269_v61 = vshrl.u32 %v268_v58, 23  ;;  %v272_v1 = vand.u32 8388607, %v265_v57  ;;  %v161_v2 = vand.u32 2147483647, %v2747_v59  ;;  %v164_v3 = vand.u32 2139095040, %v2747_v59 }
  0x2d   :  { %v684_v18 = vand.u32 2139095040, %v2757_v7  ;;  %v2772_v23 = vsel %vm83_vm9, %v2416_v14, %v75_v13  ;;  %vm2886_vm8 = vcmp.le.f32.partialorder %v265_v57, 0.7853982 }
  0x2e   :  { %v2422_v6 = vadd.s32 4294967169, %v269_v61  ;;  %v165_v9 = vshrl.u32 %v164_v3, 23  ;;  %v168_v10 = vand.u32 8388607, %v161_v2  ;;  %v273_v15 = vor.u32 8388608, %v272_v1 }
  0x2f   :  { %v2778_v25 = vshrl.u32 %v684_v18, 23 }
  0x30   :  { %v275_v11 = vadd.s32 1, %v2422_v6  ;;  %v2418_v16 = vadd.s32 4294967169, %v165_v9  ;;  %v169_v17 = vor.u32 8388608, %v168_v10  ;;  %v2774_v24 = vshll.u32 %v273_v15, 8 }
  0x32   :  { %vm276_vm10 = vcmp.gt.s32.totalorder %v275_v11, 0  ;;  %v171_v20 = vadd.s32 1, %v2418_v16  ;;  %v2776_v8 = vshll.u32 %v169_v17, 8 }
  0x33   :  { %v277_v19 = vsel %vm276_vm10, %v275_v11, 0 }
  0x34   :  { %v278_v21 = vshrl.u32 %v277_v19, 5  ;;  %v279_v22 = vand.u32 31, %v277_v19  ;;  %vm172_vm11 = vcmp.gt.s32.totalorder %v171_v20, 0 }
  0x35   :  { %v173_v49 = vsel %vm172_vm11, %v171_v20, 0 }
  0x36   :  { %v280_v26 = vsub.s32 32, %v279_v22  ;;  %v282_v28 = vshll.u32 %v2658_v27, %v279_v22  ;;  %v285_v31 = vshll.u32 %v2659_v30, %v279_v22  ;;  %v288_v34 = vshll.u32 %v2660_v33, %v279_v22 }
  0x37   :  { %v291_v36 = vshll.u32 %v2661_v35, %v279_v22  ;;  %v294_v38 = vshll.u32 %v2662_v37, %v279_v22  ;;  %vm297_vm12 = vcmp.lt.s32.totalorder %v278_v21, 1  ;;  %vm298_vm13 = vcmp.lt.s32.totalorder %v278_v21, 2 }
  0x38   :  { %v281_v39 = vshrl.u32 %v2658_v27, %v280_v26  ;;  %v283_v40 = vshrl.u32 %v2659_v30, %v280_v26  ;;  %v286_v41 = vshrl.u32 %v2660_v33, %v280_v26  ;;  %v289_v42 = vshrl.u32 %v2661_v35, %v280_v26 }
  0x39   :  { %v292_v43 = vshrl.u32 %v2662_v37, %v280_v26  ;;  %v295_v45 = vshrl.u32 %v2663_v44, %v280_v26  ;;  %vm299_vm14 = vcmp.lt.s32.totalorder %v278_v21, 3  ;;  %vm300_vm15 = vcmp.lt.s32.totalorder %v278_v21, 4 }
  0x3a   :  { %v284_v46 = vor.u32 %v283_v40, %v282_v28  ;;  %v287_v47 = vor.u32 %v286_v41, %v285_v31  ;;  %v290_v48 = vor.u32 %v289_v42, %v288_v34  ;;  %v174_v53 = vshrl.u32 %v173_v49, 5 }
  0x3b   :  { %v293_v50 = vor.u32 %v292_v43, %v291_v36  ;;  %v296_v52 = vor.u32 %v295_v45, %v294_v38  ;;  %v175_v54 = vand.u32 31, %v173_v49  ;;  %v2438_v40 = vadd.s32 4294967169, %v2778_v25 }
  0x3c   :  { %v301_v55 = vsel %vm297_vm12, %v281_v39, %v284_v46  ;;  %v302_v56 = vsel %vm300_vm15, %v290_v48, 2102212464  ;;  %v305_v58 = vsel %vm297_vm12, %v284_v46, %v287_v47  ;;  %v309_v60 = vsel %vm297_vm12, %v287_v47, %v290_v48 }
  0x3d   :  { %v303_v61 = vsel %vm299_vm14, %v287_v47, %v302_v56  ;;  %v306_v62 = vsel %vm300_vm15, %v293_v50, 920167782  ;;  %v310_v63 = vsel %vm300_vm15, %v296_v52, 1326507024  ;;  %v176_v0 = vsub.s32 32, %v175_v54 }
  0x3e   :  { %v304_v1 = vsel %vm298_vm13, %v301_v55, %v303_v61  ;;  %v307_v3 = vsel %vm299_vm14, %v290_v48, %v306_v62  ;;  %v311_v4 = vsel %vm299_vm14, %v293_v50, %v310_v63  ;;  %v178_v6 = vshll.u32 %v2658_v27, %v175_v54 }
  0x3f   :  { %v308_v9 = vsel %vm298_vm13, %v305_v58, %v307_v3  ;;  %v312_v10 = vsel %vm298_vm13, %v309_v60, %v311_v4  ;;  %v320_v11 = vmul.u32 %v2774_v24, %v304_v1  ;;  %v177_v13 = vshrl.u32 %v2658_v27, %v176_v0  ;;  %v2842_v3 = vld [vmem:[%s3889_s1 + $0x10] sm:$0xff] }
  0x40   :  { %v2805_v14 = vmul.u32.u64.low %v2774_v24, %v312_v10  ;;  %v2806_v15 = vmul.u32.u64.high %v2774_v24, %v312_v10, %v2805_v14  ;;  %v2809_v16 = vmul.u32.u64.low %v2774_v24, %v308_v9  ;;  %v2810_v17 = vmul.u32.u64.high %v2774_v24, %v308_v9, %v2809_v16 }
  0x41   :  { %v179_v18 = vshrl.u32 %v2659_v30, %v176_v0  ;;  %v181_v19 = vshll.u32 %v2659_v30, %v175_v54  ;;  %v182_v20 = vshrl.u32 %v2660_v33, %v176_v0  ;;  %v184_v21 = vshll.u32 %v2660_v33, %v175_v54 }
  0x42   :  { %v185_v22 = vshrl.u32 %v2661_v35, %v176_v0  ;;  %v187_v26 = vshll.u32 %v2661_v35, %v175_v54  ;;  %v188_v28 = vshrl.u32 %v2662_v37, %v176_v0  ;;  %v190_v31 = vshll.u32 %v2662_v37, %v175_v54 }
  0x43   :  { %v180_v34 = vor.u32 %v179_v18, %v178_v6  ;;  %v183_v24 = vor.u32 %v182_v20, %v181_v19  ;;  %v191_v36 = vshrl.u32 %v2663_v44, %v176_v0  ;;  %vm193_vm0 = vcmp.lt.s32.totalorder %v174_v53, 1 }
  0x44   :  { %vm322_vm1 = vc.u32 %v2806_v15, %v2809_v16  ;;  %v323_v38 = vadd.s32 1, %v2810_v17  ;;  %v186_v39 = vor.u32 %v185_v22, %v184_v21  ;;  %v189_v41 = vor.u32 %v188_v28, %v187_v26 }
  0x45   :  { %v192_v42 = vor.u32 %v191_v36, %v190_v31  ;;  %vm194_vm2 = vcmp.lt.s32.totalorder %v174_v53, 2  ;;  %vm195_vm3 = vcmp.lt.s32.totalorder %v174_v53, 3  ;;  %vm196_vm4 = vcmp.lt.s32.totalorder %v174_v53, 4 }
  0x46   :  { %v324_v43 = vsel %vm322_vm1, %v323_v38, %v2810_v17  ;;  %v197_v45 = vsel %vm193_vm0, %v177_v13, %v180_v34  ;;  %v201_v46 = vsel %vm193_vm0, %v180_v34, %v183_v24  ;;  %v198_v48 = vsel %vm196_vm4, %v186_v39, 2102212464 }
  0x47   :  { %v325_v47 = vadd.s32 %v324_v43, %v320_v11  ;;  %v202_v49 = vsel %vm196_vm4, %v189_v41, 920167782  ;;  %v205_v50 = vsel %vm193_vm0, %v183_v24, %v186_v39  ;;  %v199_v52 = vsel %vm195_vm3, %v183_v24, %v198_v48 }
  0x48   :  { %v203_v54 = vsel %vm195_vm3, %v186_v39, %v202_v49  ;;  %v206_v55 = vsel %vm196_vm4, %v192_v42, 1326507024  ;;  %v691_v25 = vadd.s32 1, %v2438_v40  ;;  %v681_v61 = vand.u32 2147483647, %v2757_v7 }
  0x49   :  { %v326_v56 = vadd.s32 536870912, %v325_v47  ;;  %v204_v58 = vsel %vm194_vm2, %v201_v46, %v203_v54  ;;  %v207_v60 = vsel %vm195_vm3, %v189_v41, %v206_v55  ;;  %v200_v62 = vsel %vm194_vm2, %v197_v45, %v199_v52 }
  0x4a   :  { %v208_v63 = vsel %vm194_vm2, %v205_v50, %v207_v60  ;;  %v2835_v0 = vmul.u32.u64.low %v2776_v8, %v204_v58  ;;  %v2836_v1 = vmul.u32.u64.high %v2776_v8, %v204_v58, %v2835_v0  ;;  %vm692_vm5 = vcmp.gt.s32.totalorder %v691_v25, 0 }
  0x4b   :  { %v327_v4 = vshrl.u32 %v326_v56, 30  ;;  %v2845_v6 = vmul.u32.u64.low %v2776_v8, %v208_v63  ;;  %v2846_v9 = vmul.u32.u64.high %v2776_v8, %v208_v63, %v2845_v6  ;;  %v693_v10 = vsel %vm692_vm5, %v691_v25, 0 }
  0x4c   :  { %v149_v53 = vmul.f32 %v2726_v32, %v138_v5  ;;  %v216_v13 = vmul.u32 %v2776_v8, %v200_v62  ;;  %v695_v14 = vand.u32 31, %v693_v10  ;;  %v87_v17 = vsub.f32 0.0, %v2842_v3 }
  0x4d   :  { %v328_v11 = vshll.u32 %v327_v4, 30  ;;  %v219_v18 = vadd.s32 1, %v2836_v1  ;;  %v688_v19 = vand.u32 8388607, %v681_v61  ;;  %v140_v20 = vsub.f32 %v2772_v23, %v2724_v29 }
  0x4e   :  { %vm218_vm6 = vc.u32 %v2846_v9, %v2835_v0  ;;  %v696_v5 = vsub.s32 32, %v695_v14  ;;  %v2864_v8 = vmul.f32 3.1415927, %v149_v53  ;;  %2598 = vlog2.f32 %v2842_v3 }
  0x4f   :  { %v2859_v21 = vsub.s32 %v325_v47, %v328_v11  ;;  %v220_v12 = vsel %vm218_vm6, %v219_v18, %v2836_v1  ;;  %2600 = vlog2.f32 %v87_v17  ;;  %v351_v28 = vsub.s32 4, %v327_v4 }
  0x50   :  { %v221_v26 = vadd.s32 %v220_v12, %v216_v13  ;;  %v689_v23 = vor.u32 8388608, %v688_v19  ;;  %v577_v31 = vand.u32 2147483647, %v2864_v8  ;;  %v2871_v34 = vmul.f32 %v2726_v32, %v140_v20 }
  0x51   :  { %v331_v22 = vsub.s32 0, %v2859_v21  ;;  %v2874_v38 = vshrl.u32 %v693_v10, 5  ;;  %v698_v39 = vshll.u32 %v2658_v27, %v695_v14  ;;  %v699_v40 = vshrl.u32 %v2659_v30, %v696_v5 }
  0x52   :  { %v222_v36 = vadd.s32 536870912, %v221_v26  ;;  %v701_v41 = vshll.u32 %v2659_v30, %v695_v14  ;;  %v702_v42 = vshrl.u32 %v2660_v33, %v696_v5  ;;  %v704_v43 = vshll.u32 %v2660_v33, %v695_v14 }
  0x53   :  { %v2423_v24 = vmin.u32 %v331_v22, %v2859_v21  ;;  %v705_v46 = vshrl.u32 %v2661_v35, %v696_v5  ;;  %v707_v47 = vshll.u32 %v2661_v35, %v695_v14  ;;  %v708_v48 = vshrl.u32 %v2662_v37, %v696_v5 }
  0x54   :  { %v321_v50 = vadd.s32 %v2809_v16, %v2806_v15  ;;  %v2892_v52 = vshrl.u32 %v222_v36, 30  ;;  %v710_v54 = vshll.u32 %v2662_v37, %v695_v14  ;;  %v2895_v55 = vshll.u32 %v689_v23, 8 }
  0x55   :  { %v333_v45 = vclz %v2423_v24  ;;  %v711_v56 = vshrl.u32 %v2663_v44, %v696_v5  ;;  %v580_v58 = vand.u32 2139095040, %v2864_v8  ;;  %v2901_v57 = vand.u32 8388607, %v577_v31 }
  0x56   :  { %v352_v60 = vsel %vm267_vm7, %v351_v28, %v327_v4  ;;  %v224_v15 = vshll.u32 %v2892_v52, 30  ;;  %v700_v16 = vor.u32 %v699_v40, %v698_v39  ;;  %v703_v62 = vor.u32 %v702_v42, %v701_v41 }
  0x57   :  { %v2424_v25 = vadd.s32 4294967294, %v333_v45  ;;  %v706_v63 = vor.u32 %v705_v46, %v704_v43  ;;  %v709_v1 = vor.u32 %v708_v48, %v707_v47  ;;  %vm713_vm10 = vcmp.lt.s32.totalorder %v2874_v38, 1 }
  0x58   :  { %v2907_v6 = vpop.eup %2598  ;;  %v2909_v53 = vsub.s32 %v221_v26, %v224_v15  ;;  %v712_v11 = vor.u32 %v711_v56, %v710_v54  ;;  %vm716_vm11 = vcmp.lt.s32.totalorder %v2874_v38, 4  ;;  %vm715_vm12 = vcmp.lt.s32.totalorder %v2874_v38, 3 }
  0x59   :  { %vm2425_vm9 = vcmp.lt.s32.totalorder %v2424_v25, 0  ;;  %v2912_v13 = vpop.eup %2600  ;;  %vm163_vm13 = vcmp.lt.s32.totalorder %v2747_v59, 0  ;;  %v697_v19 = vshrl.u32 %v2658_v27, %v696_v5  ;;  %vm714_vm14 = vcmp.lt.s32.totalorder %v2874_v38, 2 }
  0x5a   :  { %v336_v10 = vsel %vm2425_vm9, 0, %v2424_v25  ;;  %v227_v18 = vsub.s32 0, %v2909_v53  ;;  %v718_v20 = vsel %vm716_vm11, %v706_v63, 2102212464  ;;  %v721_v26 = vsel %vm713_vm10, %v700_v16, %v703_v62 }
  0x5b   :  { %v337_v4 = vsub.s32 32, %v336_v10  ;;  %v338_v14 = vshll.u32 %v2859_v21, %v336_v10  ;;  %v341_v17 = vsub.s32 4294967266, %v336_v10  ;;  %v722_v21 = vsel %vm716_vm11, %v709_v1, 920167782 }
  0x5c   :  { %v2419_v28 = vmin.u32 %v227_v18, %v2909_v53  ;;  %v723_v23 = vsel %vm715_vm12, %v706_v63, %v722_v21  ;;  %v725_v5 = vsel %vm713_vm10, %v703_v62, %v706_v63  ;;  %v726_v24 = vsel %vm716_vm11, %v712_v11, 1326507024 }
  0x5d   :  { %v339_v12 = vshrl.u32 %v321_v50, %v337_v4  ;;  %v342_v22 = vadd.s32 127, %v341_v17  ;;  %v2935_v40 = vsel %vm2886_vm8, 0, %v352_v60  ;;  %vm2939_vm15 = vcmp.le.f32.partialorder %v161_v2, 0.7853982 }
  0x5e   :  { %v727_v42 = vsel %vm715_vm12, %v709_v1, %v726_v24  ;;  %v229_v43 = vclz %v2419_v28  ;;  %v717_v45 = vsel %vm713_vm10, %v697_v19, %v700_v16  ;;  %v719_v46 = vsel %vm715_vm12, %v703_v62, %v718_v20 }
  0x5f   :  { %v340_v36 = vor.u32 %v339_v12, %v338_v14  ;;  %v343_v39 = vshll.u32 %v342_v22, 23  ;;  %v724_v47 = vsel %vm714_vm14, %v721_v26, %v723_v23  ;;  %v247_v2 = vsub.s32 4, %v2892_v52 }
  0x60   :  { %v728_v54 = vsel %vm714_vm14, %v725_v5, %v727_v42  ;;  %v2420_v25 = vadd.s32 4294967294, %v229_v43  ;;  %v581_v15 = vshrl.u32 %v580_v58, 23  ;;  %v720_v62 = vsel %vm714_vm14, %v717_v45, %v719_v46 }
  0x61   :  { %v344_v48 = vor.u32 4788187, %v343_v39  ;;  %v347_v50 = vcvt.s32.f32 %v340_v36  ;;  %v2955_v56 = vmul.u32.u64.low %v2895_v55, %v728_v54  ;;  %v2956_v60 = vmul.u32.u64.high %v2895_v55, %v728_v54, %v2955_v56  ;;  %v2993_v39 = vld [vmem:[%s3889_s1 + $0x38] sm:$0xff] }
  0x62   :  { %v2961_v63 = vmul.u32.u64.low %v2895_v55, %v724_v47  ;;  %v2962_v1 = vmul.u32.u64.high %v2895_v55, %v724_v47, %v2961_v63  ;;  %v358_v10 = vadd.s32 3, %v2935_v40  ;;  %v217_v11 = vadd.s32 %v2835_v0, %v2846_v9 }
  0x63   :  { %v345_v16 = vand.u32 2147483647, %v344_v48  ;;  %vm2421_vm0 = vcmp.lt.s32.totalorder %v2420_v25, 0  ;;  %v2434_v4 = vadd.s32 4294967169, %v581_v15  ;;  %v248_v58 = vsel %vm163_vm13, %v247_v2, %v2892_v52 }
  0x64   :  { %v232_v17 = vsel %vm2421_vm0, 0, %v2420_v25  ;;  %v2971_v38 = vmul.f32 3.1415927, %v2871_v34  ;;  %v736_v12 = vmul.u32 %v2895_v55, %v720_v62  ;;  %vm738_vm1 = vc.u32 %v2956_v60, %v2961_v63 }
  0x65   :  { %v348_v14 = vmul.f32 %v347_v50, %v345_v16  ;;  %v233_v18 = vsub.s32 32, %v232_v17  ;;  %v234_v19 = vshll.u32 %v2909_v53, %v232_v17  ;;  %v237_v20 = vsub.s32 4294967266, %v232_v17 }
  0x66   :  { %v739_v0 = vadd.s32 1, %v2962_v1  ;;  %v587_v9 = vadd.s32 1, %v2434_v4  ;;  %v2977_v26 = vand.u32 3, %v358_v10  ;;  %v2981_v34 = vsel %vm2939_vm15, 0, %v248_v58 }
  0x67   :  { %v349_v22 = vxor.u32 2147483648, %v348_v14  ;;  %v235_v21 = vshrl.u32 %v217_v11, %v233_v18  ;;  %v238_v28 = vadd.s32 127, %v237_v20  ;;  %v788_v55 = vand.u32 2139095040, %v2971_v38 }
  0x68   :  { %v740_v53 = vsel %vm738_vm1, %v739_v0, %v2962_v1  ;;  %vm588_vm2 = vcmp.gt.s32.totalorder %v587_v9, 0  ;;  %v254_v42 = vadd.s32 3, %v2981_v34  ;;  %v585_v43 = vor.u32 8388608, %v2901_v57 }
  0x69   :  { %v350_v52 = vsel %vm267_vm7, %v349_v22, %v348_v14  ;;  %v236_v5 = vor.u32 %v235_v21, %v234_v19  ;;  %v239_v24 = vshll.u32 %v238_v28, 23  ;;  %v741_v36 = vadd.s32 %v740_v53, %v736_v12 }
  0x6a   :  { %v353_v23 = vsel %vm2886_vm8, %v2740_v51, %v350_v52  ;;  %v589_v45 = vsel %vm588_vm2, %v587_v9, 0  ;;  %v789_v50 = vshrl.u32 %v788_v55, 23  ;;  %v2998_v2 = vmul.f32 0.6931472, %v2907_v6 }
  0x6b   :  { %2602 = vcosq.f32 %v353_v23  ;;  %v240_v46 = vor.u32 4788187, %v239_v24  ;;  %v243_v47 = vcvt.s32.f32 %v236_v5  ;;  %v742_v48 = vadd.s32 536870912, %v741_v36 }
  0x6c   :  { %2604 = vsinq.f32 %v353_v23  ;;  %v591_v49 = vand.u32 31, %v589_v45  ;;  %v92_v54 = vsub.f32 0.0, %v2993_v39  ;;  %v3004_v15 = vmul.f32 0.6931472, %v2912_v13 }
  0x6d   :  { %v241_v25 = vand.u32 2147483647, %v240_v46  ;;  %v3001_v56 = vshrl.u32 %v742_v48, 30  ;;  %2606 = vlog2.f32 %v2993_v39  ;;  %vm360_vm3 = vcmp.lt.s32.totalorder %v2977_v26, 2 }
  0x6e   :  { %vm361_vm4 = vcmp.eq.s32.totalorder %v2977_v26, 0  ;;  %vm364_vm5 = vcmp.eq.s32.totalorder %v2977_v26, 2  ;;  %v592_v57 = vsub.s32 32, %v591_v49  ;;  %vm357_vm6 = vweird.f32 %v2740_v51 }
  0x6f   :  { %v244_v6 = vmul.f32 %v243_v47, %v241_v25  ;;  %v3011_v16 = vand.u32 3, %v254_v42  ;;  %v744_v62 = vshll.u32 %v3001_v56, 30  ;;  %v3014_v1 = vshll.u32 %v585_v43, 8 }
  0x70   :  { %v3017_v13 = vadd.s32 %v2961_v63, %v2956_v60  ;;  %v3019_v10 = vshrl.u32 %v589_v45, 5  ;;  %v594_v11 = vshll.u32 %v2658_v27, %v591_v49  ;;  %v3022_v4 = vadd.s32 4294967169, %v789_v50 }
  0x71   :  { %v245_v14 = vxor.u32 2147483648, %v244_v6  ;;  %vm683_vm7 = vcmp.lt.s32.totalorder %v2757_v7, 0  ;;  %v3025_v17 = vsub.s32 %v741_v36, %v744_v62  ;;  %v595_v58 = vshrl.u32 %v2659_v30, %v592_v57 }
  0x72   :  { %v597_v18 = vshll.u32 %v2659_v30, %v591_v49  ;;  %v598_v19 = vshrl.u32 %v2660_v33, %v592_v57  ;;  %v600_v60 = vshll.u32 %v2660_v33, %v591_v49  ;;  %v603_v63 = vshll.u32 %v2661_v35, %v591_v49 }
  0x73   :  { %v604_v20 = vshrl.u32 %v2662_v37, %v592_v57  ;;  %v246_v12 = vsel %vm163_vm13, %v245_v14, %v244_v6  ;;  %v747_v22 = vsub.s32 0, %v3025_v17  ;;  %v767_v0 = vsub.s32 4, %v3001_v56 }
  0x74   :  { %v601_v9 = vshrl.u32 %v2661_v35, %v592_v57  ;;  %v249_v28 = vsel %vm2939_vm15, %v2747_v59, %v246_v12  ;;  %v593_v52 = vshrl.u32 %v2658_v27, %v592_v57  ;;  %v606_v53 = vshll.u32 %v2662_v37, %v591_v49 }
  0x75   :  { %v3038_v21 = vpop.eup %2602  ;;  %v607_v55 = vshrl.u32 %v2663_v44, %v592_v57  ;;  %2608 = vcosq.f32 %v249_v28  ;;  %vm3051_vm8 = vcmp.le.f32.partialorder %v681_v61, 0.7853982  ;;  %v2439_v41 = vmin.u32 %v747_v22, %v3025_v17 }
  0x76   :  { %v3046_v23 = vpop.eup %2604  ;;  %v3892_v5 = vxor.u32 2147483648, %v3038_v21  ;;  %v596_v36 = vor.u32 %v595_v58, %v594_v11  ;;  %2610 = vsinq.f32 %v249_v28  ;;  %v599_v43 = vor.u32 %v598_v19, %v597_v18 }
  0x77   :  { %v3893_v42 = vxor.u32 2147483648, %v3046_v23  ;;  %v605_v45 = vor.u32 %v604_v20, %v603_v63  ;;  %v3057_v46 = vpop.eup %2606  ;;  %vm260_vm9 = vcmp.eq.s32.totalorder %v3011_v16, 2  ;;  %v749_v61 = vclz %v2439_v41 }
  0x78   :  { %v366_v47 = vsel %vm364_vm5, %v3892_v5, %v3046_v23  ;;  %v602_v48 = vor.u32 %v601_v9, %v600_v60  ;;  %vm609_vm10 = vcmp.lt.s32.totalorder %v3019_v10, 1  ;;  %vm257_vm11 = vcmp.eq.s32.totalorder %v3011_v16, 0 }
  0x79   :  { %v363_v49 = vsel %vm361_vm4, %v3038_v21, %v3893_v42  ;;  %v608_v50 = vor.u32 %v607_v55, %v606_v53  ;;  %vm611_vm12 = vcmp.lt.s32.totalorder %v3019_v10, 3  ;;  %vm612_vm13 = vcmp.lt.s32.totalorder %v3019_v10, 4 }
  0x7a   :  { %v367_v25 = vsel %vm360_vm3, %v363_v49, %v366_v47  ;;  %vm256_vm14 = vcmp.lt.s32.totalorder %v3011_v16, 2  ;;  %v2440_v57 = vadd.s32 4294967294, %v749_v61  ;;  %vm610_vm15 = vcmp.lt.s32.totalorder %v3019_v10, 2 }
  0x7b   :  { %v614_v6 = vsel %vm612_vm13, %v602_v48, 2102212464  ;;  %v3082_v62 = vsel %vm357_vm6, nan, %v367_v25  ;;  %vm253_vm0 = vweird.f32 %v2747_v59  ;;  %v768_v11 = vsel %vm683_vm7, %v767_v0, %v3001_v56 }
  0x7c   :  { %v617_v26 = vsel %vm609_vm10, %v596_v36, %v599_v43  ;;  %v618_v14 = vsel %vm612_vm13, %v605_v45, 920167782  ;;  %1830 = vperm.xlu1 %2575, %v3082_v62   ;;  %vm2441_vm1 = vcmp.lt.s32.totalorder %v2440_v57, 0  ;;  %v613_v58 = vsel %vm609_vm10, %v593_v52, %v596_v36 }
  0x7d   :  { %v615_v18 = vsel %vm611_vm12, %v599_v43, %v614_v6  ;;  %v619_v19 = vsel %vm611_vm12, %v602_v48, %v618_v14  ;;  %v752_v60 = vsel %vm2441_vm1, 0, %v2440_v57  ;;  %v621_v63 = vsel %vm609_vm10, %v599_v43, %v602_v48 }
  0x7e   :  { %v620_v56 = vsel %vm610_vm15, %v617_v26, %v619_v19  ;;  %v622_v20 = vsel %vm612_vm13, %v608_v50, 1326507024  ;;  %v753_v12 = vsub.s32 32, %v752_v60  ;;  %v754_v22 = vshll.u32 %v3025_v17, %v752_v60 }
  0x7f   :  { %v757_v0 = vsub.s32 4294967266, %v752_v60  ;;  %v785_v9 = vand.u32 2147483647, %v2971_v38  ;;  %v3109_v28 = vsel %vm3051_vm8, 0, %v768_v11  ;;  %v623_v52 = vsel %vm611_vm12, %v605_v45, %v622_v20  ;;  %v3118_v41 = vpop.eup %2608 }
  0x80   :  { %v3114_v53 = vmul.u32.u64.low %v3014_v1, %v620_v56  ;;  %v3115_v55 = vmul.u32.u64.high %v3014_v1, %v620_v56, %v3114_v53  ;;  %v755_v36 = vshrl.u32 %v3017_v13, %v753_v12  ;;  %v616_v43 = vsel %vm610_vm15, %v613_v58, %v615_v18  ;;  %v3125_v61 = vpop.eup %2610 }
  0x81   :  { %v758_v17 = vadd.s32 127, %v757_v0  ;;  %v624_v47 = vsel %vm610_vm15, %v621_v63, %v623_v52  ;;  %v3894_v45 = vxor.u32 2147483648, %v3118_v41  ;;  %v795_v50 = vadd.s32 1, %v3022_v4 }
  0x82   :  { %v3129_v48 = vmul.u32.u64.low %v3014_v1, %v624_v47  ;;  %v3130_v49 = vmul.u32.u64.high %v3014_v1, %v624_v47, %v3129_v48  ;;  %v3895_v25 = vxor.u32 2147483648, %v3125_v61  ;;  %v756_v13 = vor.u32 %v755_v36, %v754_v22 }
  0x83   :  { %v759_v57 = vshll.u32 %v758_v17, 23  ;;  %v774_v6 = vadd.s32 3, %v3109_v28  ;;  %v262_v10 = vsel %vm260_vm9, %v3894_v45, %v3125_v61  ;;  %v632_v11 = vmul.u32 %v3014_v1, %v616_v43 }
  0x84   :  { %v635_v26 = vadd.s32 1, %v3115_v55  ;;  %vm796_vm2 = vcmp.gt.s32.totalorder %v795_v50, 0  ;;  %v259_v4 = vsel %vm257_vm11, %v3118_v41, %v3895_v25  ;;  %v763_v58 = vcvt.s32.f32 %v756_v13 }
  0x85   :  { %v760_v14 = vor.u32 4788187, %v759_v57  ;;  %v797_v18 = vsel %vm796_vm2, %v795_v50, 0  ;;  %v263_v19 = vsel %vm256_vm14, %v259_v4, %v262_v10  ;;  %vm634_vm3 = vc.u32 %v3130_v49, %v3114_v53 }
  0x86   :  { %v792_v1 = vand.u32 8388607, %v785_v9  ;;  %2612 = vlog2.f32 %v92_v54  ;;  %v3157_v60 = vsel %vm253_vm0, nan, %v263_v19  ;;  %v636_v63 = vsel %vm634_vm3, %v635_v26, %v3115_v55 }
  0x87   :  { %v761_v56 = vand.u32 2147483647, %v760_v14  ;;  %v799_v20 = vand.u32 31, %v797_v18  ;;  %1825 = vperm.xlu0 %2574, %v3157_v60   ;;  %v3161_v16 = vand.u32 3, %v774_v6  ;;  %v637_v12 = vadd.s32 %v636_v63, %v632_v11 }
  0x88   :  { %v63_v22 = vadd.f32 1.0, %v2998_v2  ;;  %v111_v0 = vsub.f32 0.0, %v3004_v15  ;;  %vm39_vm4 = vcmp.gt.f32.partialorder %v2842_v3, 1.0  ;;  %v793_v55 = vor.u32 8388608, %v792_v1 }
  0x89   :  { %v764_v52 = vmul.f32 %v763_v58, %v761_v56  ;;  %v800_v36 = vsub.s32 32, %v799_v20  ;;  %v802_v54 = vshll.u32 %v2658_v27, %v799_v20  ;;  %v805_v17 = vshll.u32 %v2659_v30, %v799_v20 }
  0x8a   :  { %v638_v43 = vadd.s32 536870912, %v637_v12  ;;  %v798_v47 = vshrl.u32 %v797_v18, 5  ;;  %v808_v48 = vshll.u32 %v2660_v33, %v799_v20  ;;  %v811_v15 = vshll.u32 %v2661_v35, %v799_v20 }
  0x8b   :  { %v765_v50 = vxor.u32 2147483648, %v764_v52  ;;  %v803_v13 = vshrl.u32 %v2659_v30, %v800_v36  ;;  %v806_v2 = vshrl.u32 %v2660_v33, %v800_v36  ;;  %v809_v6 = vshrl.u32 %v2661_v35, %v800_v36 }
  0x8c   :  { %v639_v57 = vshrl.u32 %v638_v43, 30  ;;  %v812_v10 = vshrl.u32 %v2662_v37, %v800_v36  ;;  %v814_v11 = vshll.u32 %v2662_v37, %v799_v20  ;;  %vm79_vm5 = vcmp.lt.f32.partialorder %v2842_v3, -1.0 }
  0x8d   :  { %v766_v26 = vsel %vm683_vm7, %v765_v50, %v764_v52  ;;  %v804_v4 = vor.u32 %v803_v13, %v802_v54  ;;  %v807_v14 = vor.u32 %v806_v2, %v805_v17  ;;  %v815_v58 = vshrl.u32 %v2663_v44, %v800_v36 }
  0x8e   :  { %v769_v18 = vsel %vm3051_vm8, %v2757_v7, %v766_v26  ;;  %v640_v19 = vshll.u32 %v639_v57, 30  ;;  %v801_v1 = vshrl.u32 %v2658_v27, %v800_v36  ;;  %vm817_vm9 = vcmp.lt.s32.totalorder %v798_v47, 1 }
  0x8f   :  { %2614 = vcosq.f32 %v769_v18  ;;  %v810_v56 = vor.u32 %v809_v6, %v808_v48  ;;  %v813_v63 = vor.u32 %v812_v10, %v811_v15  ;;  %v816_v20 = vor.u32 %v815_v58, %v814_v11 }
  0x90   :  { %v2613_v43 = vpop.eup %2612  ;;  %2616 = vsinq.f32 %v769_v18  ;;  %v3183_v5 = vsub.s32 %v637_v12, %v640_v19  ;;  %vm819_vm7 = vcmp.lt.s32.totalorder %v798_v47, 3  ;;  %vm820_vm10 = vcmp.lt.s32.totalorder %v798_v47, 4 }
  0x91   :  { %vm818_vm11 = vcmp.lt.s32.totalorder %v798_v47, 2  ;;  %v822_v52 = vsel %vm820_vm10, %v810_v56, 2102212464  ;;  %v825_v54 = vsel %vm817_vm9, %v804_v4, %v807_v14  ;;  %v833_v24 = vshll.u32 %v793_v55, 8 }
  0x92   :  { %v643_v17 = vsub.s32 0, %v3183_v5  ;;  %v821_v36 = vsel %vm817_vm9, %v801_v1, %v804_v4  ;;  %v826_v50 = vsel %vm820_vm10, %v813_v63, 920167782  ;;  %v2412_v13 = vadd.f32 -1.0, %v111_v0 }
  0x93   :  { %v823_v48 = vsel %vm819_vm7, %v807_v14, %v822_v52  ;;  %v827_v2 = vsel %vm819_vm7, %v810_v56, %v826_v50  ;;  %v829_v12 = vsel %vm817_vm9, %v807_v14, %v810_v56  ;;  %v830_v15 = vsel %vm820_vm10, %v816_v20, 1326507024 }
  0x94   :  { %vm773_vm8 = vweird.f32 %v2757_v7  ;;  %v2435_v6 = vmin.u32 %v643_v17, %v3183_v5  ;;  %v828_v10 = vsel %vm818_vm11, %v825_v54, %v827_v2  ;;  %v831_v55 = vsel %vm819_vm7, %v813_v63, %v830_v15 }
  0x95   :  { %v71_v11 = vsel %vm39_vm4, %v63_v22, %v2842_v3  ;;  %v663_v0 = vsub.s32 4, %v639_v57  ;;  %v832_v26 = vsel %vm818_vm11, %v829_v12, %v831_v55  ;;  %vm776_vm12 = vcmp.lt.s32.totalorder %v3161_v16, 2 }
  0x96   :  { %v3199_v4 = vmul.u32.u64.low %v833_v24, %v828_v10  ;;  %v3200_v58 = vmul.u32.u64.high %v833_v24, %v828_v10, %v3199_v4  ;;  %vm579_vm13 = vcmp.lt.s32.totalorder %v2864_v8, 0  ;;  %v645_v14 = vclz %v2435_v6 }
  0x97   :  { %v824_v18 = vsel %vm818_vm11, %v821_v36, %v823_v48  ;;  %vm44_vm14 = vcmp.gt.f32.partialorder %v2993_v39, 1.0  ;;  %v3207_v19 = vmul.u32.u64.low %v833_v24, %v832_v26  ;;  %v3208_v1 = vmul.u32.u64.high %v833_v24, %v832_v26, %v3207_v19 }
  0x98   :  { %v127_v22 = vsel %vm79_vm5, %v2412_v13, %v71_v11  ;;  %v60_v56 = vmul.f32 0.6931472, %v3057_v46  ;;  %vm777_vm15 = vcmp.eq.s32.totalorder %v3161_v16, 0  ;;  %vm780_vm1 = vcmp.eq.s32.totalorder %v3161_v16, 2 }
  0x99   :  { %v2436_v63 = vadd.s32 4294967294, %v645_v14  ;;  %v136_v20 = vsub.f32 %v127_v22, %v2724_v29  ;;  %v3216_v52 = vpop.eup %2614  ;;  %v633_v47 = vadd.s32 %v3114_v53, %v3130_v49  ;;  %v664_v54 = vsel %vm579_vm13, %v663_v0, %v639_v57 }
  0x9a   :  { %v843_v3 = vadd.s32 1, %v3200_v58  ;;  %v108_v17 = vmul.f32 0.6931472, %v2613_v43  ;;  %v3223_v36 = vpop.eup %2616  ;;  %v3896_v46 = vxor.u32 2147483648, %v3216_v52  ;;  %v840_v50 = vmul.u32 %v833_v24, %v824_v18 }
  0x9b   :  { %vm2437_vm2 = vcmp.lt.s32.totalorder %v2436_v63, 0  ;;  %v147_v13 = vmul.f32 %v2726_v32, %v136_v20  ;;  %v3897_v48 = vxor.u32 2147483648, %v3223_v36  ;;  %vm842_vm3 = vc.u32 %v3208_v1, %v3199_v4 }
  0x9c   :  { %v648_v2 = vsel %vm2437_vm2, 0, %v2436_v63  ;;  %v68_v53 = vadd.f32 1.0, %v60_v56  ;;  %v782_v49 = vsel %vm780_vm1, %v3896_v46, %v3223_v36  ;;  %v844_v15 = vsel %vm842_vm3, %v843_v3, %v3200_v58 }
  0x9d   :  { %v649_v57 = vsub.s32 32, %v648_v2  ;;  %v650_v43 = vshll.u32 %v3183_v5, %v648_v2  ;;  %v653_v12 = vsub.s32 4294967266, %v648_v2  ;;  %v779_v24 = vsel %vm777_vm15, %v3216_v52, %v3897_v48 }
  0x9e   :  { %v3242_v6 = vmul.f32 3.1415927, %v147_v13  ;;  %v116_v10 = vsub.f32 0.0, %v108_v17  ;;  %v783_v55 = vsel %vm776_vm12, %v779_v24, %v782_v49  ;;  %v845_v26 = vadd.s32 %v844_v15, %v840_v50 }
  0x9f   :  { %v651_v11 = vshrl.u32 %v633_v47, %v649_v57  ;;  %v654_v0 = vadd.s32 127, %v653_v12  ;;  %v3248_v5 = vsel %vm773_vm8, nan, %v783_v55  ;;  %vm84_vm4 = vcmp.lt.f32.partialorder %v2993_v39, -1.0 }
  0xa0   :  { %v369_v14 = vand.u32 2147483647, %v3242_v6  ;;  %v372_v18 = vand.u32 2139095040, %v3242_v6  ;;  %1850 = vperm.xlu1 %2575, %v3248_v5   ;;  %vm3256_vm5 = vcmp.le.f32.partialorder %v577_v31, 0.7853982  ;;  %v846_v22 = vadd.s32 536870912, %v845_v26 }
  0xa1   :  { %v652_v58 = vor.u32 %v651_v11, %v650_v43  ;;  %v655_v19 = vshll.u32 %v654_v0, 23  ;;  %v3262_v56 = vsel %vm3256_vm5, 0, %v664_v54  ;;  %v76_v47 = vsel %vm44_vm14, %v68_v53, %v2993_v39  ;;  %v3275_v43 = vld [vmem:[%s3889_s1 + $0x18] sm:$0xff] }
  0xa2   :  { %v373_v63 = vshrl.u32 %v372_v18, 23  ;;  %v376_v20 = vand.u32 8388607, %v369_v14  ;;  %v847_v17 = vshrl.u32 %v846_v22, 30  ;;  %v2417_v50 = vadd.f32 -1.0, %v116_v10 }
  0xa3   :  { %v656_v3 = vor.u32 4788187, %v655_v19  ;;  %v659_v31 = vcvt.s32.f32 %v652_v58  ;;  %v670_v49 = vadd.s32 3, %v3262_v56  ;;  %vm787_vm9 = vcmp.lt.s32.totalorder %v2971_v38, 0 }
  0xa4   :  { %v2426_v13 = vadd.s32 4294967169, %v373_v63  ;;  %v848_v57 = vshll.u32 %v847_v17, 30  ;;  %v132_v54 = vsel %vm84_vm4, %v2417_v50, %v76_v47  ;;  %v871_v10 = vsub.s32 4, %v847_v17 }
  0xa5   :  { %v657_v2 = vand.u32 2147483647, %v656_v3  ;;  %v141_v53 = vsub.f32 %v132_v54, %v2724_v29  ;;  %v377_v55 = vor.u32 8388608, %v376_v20  ;;  %v88_v11 = vsub.f32 0.0, %v3275_v43 }
  0xa6   :  { %v379_v12 = vadd.s32 1, %v2426_v13  ;;  %v3278_v15 = vsub.s32 %v845_v26, %v848_v57  ;;  %v3282_v0 = vand.u32 3, %v670_v49  ;;  %v841_v19 = vadd.s32 %v3199_v4, %v3208_v1 }
  0xa7   :  { %v660_v24 = vmul.f32 %v659_v31, %v657_v2  ;;  %v152_v26 = vmul.f32 %v2726_v32, %v141_v53  ;;  %2618 = vlog2.f32 %v3275_v43  ;;  %v3294_v47 = vsel %vm787_vm9, %v871_v10, %v847_v17 }
  0xa8   :  { %vm380_vm7 = vcmp.gt.s32.totalorder %v379_v12, 0  ;;  %v851_v18 = vsub.s32 0, %v3278_v15  ;;  %v3296_v3 = vshll.u32 %v377_v55, 8  ;;  %2620 = vlog2.f32 %v88_v11 }
  0xa9   :  { %v661_v39 = vxor.u32 2147483648, %v660_v24  ;;  %v381_v58 = vsel %vm380_vm7, %v379_v12, 0  ;;  %v3305_v57 = vmul.f32 3.1415927, %v152_v26  ;;  %vm676_vm10 = vcmp.eq.s32.totalorder %v3282_v0, 2 }
  0xaa   :  { %v383_v22 = vand.u32 31, %v381_v58  ;;  %v2443_v20 = vmin.u32 %v851_v18, %v3278_v15  ;;  %v382_v13 = vshrl.u32 %v381_v58, 5  ;;  %vm673_vm11 = vcmp.eq.s32.totalorder %v3282_v0, 0 }
  0xab   :  { %v662_v63 = vsel %vm579_vm13, %v661_v39, %v660_v24  ;;  %vm672_vm12 = vcmp.lt.s32.totalorder %v3282_v0, 2  ;;  %vm3318_vm13 = vcmp.le.f32.partialorder %v785_v9, 0.7853982  ;;  %vm669_vm15 = vweird.f32 %v2864_v8 }
  0xac   :  { %v665_v4 = vsel %vm3256_vm5, %v2864_v8, %v662_v63  ;;  %v384_v1 = vsub.s32 32, %v383_v22  ;;  %v386_v31 = vshll.u32 %v2658_v27, %v383_v22  ;;  %v853_v50 = vclz %v2443_v20 }
  0xad   :  { %2622 = vcosq.f32 %v665_v4  ;;  %v389_v2 = vshll.u32 %v2659_v30, %v383_v22  ;;  %v392_v12 = vshll.u32 %v2660_v33, %v383_v22  ;;  %v395_v10 = vshll.u32 %v2661_v35, %v383_v22 }
  0xae   :  { %2624 = vsinq.f32 %v665_v4  ;;  %v385_v49 = vshrl.u32 %v2658_v27, %v384_v1  ;;  %v387_v17 = vshrl.u32 %v2659_v30, %v384_v1  ;;  %v2444_v16 = vadd.s32 4294967294, %v853_v50 }
  0xaf   :  { %v390_v54 = vshrl.u32 %v2660_v33, %v384_v1  ;;  %v393_v53 = vshrl.u32 %v2661_v35, %v384_v1  ;;  %v396_v55 = vshrl.u32 %v2662_v37, %v384_v1  ;;  %v398_v11 = vshll.u32 %v2662_v37, %v383_v22 }
  0xb0   :  { %v388_v24 = vor.u32 %v387_v17, %v386_v31  ;;  %vm2445_vm14 = vcmp.lt.s32.totalorder %v2444_v16, 0  ;;  %v399_v26 = vshrl.u32 %v2663_v44, %v384_v1  ;;  %vm401_vm1 = vcmp.lt.s32.totalorder %v382_v13, 1 }
  0xb1   :  { %v391_v18 = vor.u32 %v390_v54, %v389_v2  ;;  %v394_v58 = vor.u32 %v393_v53, %v392_v12  ;;  %v856_v63 = vsel %vm2445_vm14, 0, %v2444_v16  ;;  %v397_v20 = vor.u32 %v396_v55, %v395_v10  ;;  %v2619_v9 = vpop.eup %2618 }
  0xb2   :  { %vm402_vm2 = vcmp.lt.s32.totalorder %v382_v13, 2  ;;  %v857_v22 = vsub.s32 32, %v856_v63  ;;  %v858_v4 = vshll.u32 %v3278_v15, %v856_v63  ;;  %v861_v31 = vsub.s32 4294967266, %v856_v63  ;;  %v2621_v16 = vpop.eup %2620 }
  0xb3   :  { %v400_v50 = vor.u32 %v399_v26, %v398_v11  ;;  %vm403_vm3 = vcmp.lt.s32.totalorder %v382_v13, 3  ;;  %vm404_vm4 = vcmp.lt.s32.totalorder %v382_v13, 4  ;;  %v405_v17 = vsel %vm401_vm1, %v385_v49, %v388_v24 }
  0xb4   :  { %v409_v2 = vsel %vm401_vm1, %v388_v24, %v391_v18  ;;  %v859_v54 = vshrl.u32 %v841_v19, %v857_v22  ;;  %v862_v1 = vadd.s32 127, %v861_v31  ;;  %v406_v12 = vsel %vm404_vm4, %v394_v58, 2102212464 }
  0xb5   :  { %v410_v53 = vsel %vm404_vm4, %v397_v20, 920167782  ;;  %v407_v10 = vsel %vm403_vm3, %v391_v18, %v406_v12  ;;  %v413_v15 = vsel %vm401_vm1, %v391_v18, %v394_v58  ;;  %v414_v63 = vsel %vm404_vm4, %v400_v50, 1326507024 }
  0xb6   :  { %v411_v55 = vsel %vm403_vm3, %v394_v58, %v410_v53  ;;  %v860_v26 = vor.u32 %v859_v54, %v858_v4  ;;  %v863_v42 = vshll.u32 %v862_v1, 23  ;;  %v408_v45 = vsel %vm402_vm2, %v405_v17, %v407_v10 }
  0xb7   :  { %v2623_v11 = vpop.eup %2622  ;;  %v412_v49 = vsel %vm402_vm2, %v409_v2, %v411_v55  ;;  %v415_v22 = vsel %vm403_vm3, %v397_v20, %v414_v63  ;;  %v3344_v50 = vsel %vm3318_vm13, 0, %v3294_v47  ;;  %v424_v13 = vmul.u32 %v3296_v3, %v408_v45 }
  0xb8   :  { %v2625_v24 = vpop.eup %2624  ;;  %v677_v19 = vxor.u32 2147483648, %v2623_v11  ;;  %v3334_v31 = vmul.u32.u64.low %v3296_v3, %v412_v49  ;;  %v3335_v25 = vmul.u32.u64.high %v3296_v3, %v412_v49, %v3334_v31  ;;  %v864_v53 = vor.u32 4788187, %v863_v42 }
  0xb9   :  { %v674_v12 = vxor.u32 2147483648, %v2625_v24  ;;  %v867_v18 = vcvt.s32.f32 %v860_v26  ;;  %v416_v58 = vsel %vm402_vm2, %v413_v15, %v415_v22  ;;  %v892_v10 = vand.u32 2139095040, %v3305_v57 }
  0xba   :  { %v678_v4 = vsel %vm676_vm10, %v677_v19, %v2625_v24  ;;  %v3347_v20 = vmul.u32.u64.low %v3296_v3, %v416_v58  ;;  %v3348_v17 = vmul.u32.u64.high %v3296_v3, %v416_v58, %v3347_v20  ;;  %v865_v54 = vand.u32 2147483647, %v864_v53 }
  0xbb   :  { %v675_v2 = vsel %vm673_vm11, %v2623_v11, %v674_v12  ;;  %v427_v1 = vadd.s32 1, %v3335_v25  ;;  %v878_v15 = vadd.s32 3, %v3344_v50  ;;  %v52_v63 = vmul.f32 0.6931472, %v2619_v9 }
  0xbc   :  { %v679_v42 = vsel %vm672_vm12, %v675_v2, %v678_v4  ;;  %v868_v55 = vmul.f32 %v867_v18, %v865_v54  ;;  %vm426_vm5 = vc.u32 %v3348_v17, %v3334_v31  ;;  %v893_v0 = vshrl.u32 %v892_v10, 23 }
  0xbd   :  { %v3359_v47 = vsel %vm669_vm15, nan, %v679_v42  ;;  %v428_v45 = vsel %vm426_vm5, %v427_v1, %v3335_v25  ;;  %v100_v3 = vmul.f32 0.6931472, %v2621_v16  ;;  %vm40_vm7 = vcmp.gt.f32.partialorder %v3275_v43, 1.0 }
  0xbe   :  { %1845 = vperm.xlu0 %2574, %v3359_v47   ;;  %v869_v26 = vxor.u32 2147483648, %v868_v55  ;;  %v429_v49 = vadd.s32 %v428_v45, %v424_v13  ;;  %v2446_v22 = vadd.s32 4294967169, %v893_v0  ;;  %v1498_v53 = vand.u32 3, %v3262_v56 }
  0xbf   :  { %v3370_v9 = vand.u32 3, %v878_v15  ;;  %v64_v58 = vadd.f32 1.0, %v52_v63  ;;  %v112_v4 = vsub.f32 0.0, %v100_v3  ;;  %v889_v25 = vand.u32 2147483647, %v3305_v57 }
  0xc0   :  { %v870_v18 = vsel %vm787_vm9, %v869_v26, %v868_v55  ;;  %v430_v2 = vadd.s32 536870912, %v429_v49  ;;  %v899_v16 = vadd.s32 1, %v2446_v22  ;;  %vm1499_vm10 = vcmp.lt.s32.totalorder %v1498_v53, 2 }
  0xc1   :  { %v873_v20 = vsel %vm3318_vm13, %v2971_v38, %v870_v18  ;;  %vm1500_vm11 = vcmp.eq.s32.totalorder %v1498_v53, 0  ;;  %vm1503_vm12 = vcmp.eq.s32.totalorder %v1498_v53, 2  ;;  %v2413_v13 = vadd.f32 -1.0, %v112_v4 }
  0xc2   :  { %2626 = vcosq.f32 %v873_v20  ;;  %v3376_v56 = vshrl.u32 %v430_v2, 30  ;;  %vm900_vm9 = vcmp.gt.s32.totalorder %v899_v16, 0  ;;  %v1502_v54 = vsel %vm1500_vm11, %v2623_v11, %v674_v12 }
  0xc3   :  { %2628 = vsinq.f32 %v873_v20  ;;  %v901_v42 = vsel %vm900_vm9, %v899_v16, 0  ;;  %v1505_v1 = vsel %vm1503_vm12, %v677_v19, %v2625_v24  ;;  %v72_v55 = vsel %vm40_vm7, %v64_v58, %v3275_v43 }
  0xc4   :  { %v432_v10 = vshll.u32 %v3376_v56, 30  ;;  %v903_v39 = vand.u32 31, %v901_v42  ;;  %vm80_vm13 = vcmp.lt.f32.partialorder %v3275_v43, -1.0  ;;  %vm880_vm14 = vcmp.lt.s32.totalorder %v3370_v9, 2 }
  0xc5   :  { %vm881_vm1 = vcmp.eq.s32.totalorder %v3370_v9, 0  ;;  %v3386_v15 = vsel %vm1499_vm10, %v1502_v54, %v1505_v1  ;;  %vm877_vm2 = vweird.f32 %v2971_v38  ;;  %vm884_vm3 = vcmp.eq.s32.totalorder %v3370_v9, 2 }
  0xc6   :  { %v3390_v11 = vsub.s32 %v429_v49, %v432_v10  ;;  %v896_v24 = vand.u32 8388607, %v889_v25  ;;  %v904_v19 = vsub.s32 32, %v903_v39  ;;  %v902_v12 = vshrl.u32 %v901_v42, 5 }
  0xc7   :  { %v906_v43 = vshll.u32 %v2658_v27, %v903_v39  ;;  %v909_v63 = vshll.u32 %v2659_v30, %v903_v39  ;;  %v128_v0 = vsel %vm80_vm13, %v2413_v13, %v72_v55  ;;  %v912_v3 = vshll.u32 %v2660_v33, %v903_v39 }
  0xc8   :  { %v435_v26 = vsub.s32 0, %v3390_v11  ;;  %v907_v45 = vshrl.u32 %v2659_v30, %v904_v19  ;;  %v915_v22 = vshll.u32 %v2661_v35, %v903_v39  ;;  %v910_v49 = vshrl.u32 %v2660_v33, %v904_v19 }
  0xc9   :  { %v913_v53 = vshrl.u32 %v2661_v35, %v904_v19  ;;  %v916_v18 = vshrl.u32 %v2662_v37, %v904_v19  ;;  %v918_v58 = vshll.u32 %v2662_v37, %v903_v39  ;;  %v425_v4 = vadd.s32 %v3334_v31, %v3348_v17 }
  0xca   :  { %v2427_v20 = vmin.u32 %v435_v26, %v3390_v11  ;;  %v897_v2 = vor.u32 8388608, %v896_v24  ;;  %v919_v16 = vshrl.u32 %v2663_v44, %v904_v19  ;;  %v905_v42 = vshrl.u32 %v2658_v27, %v904_v19 }
  0xcb   :  { %v908_v13 = vor.u32 %v907_v45, %v906_v43  ;;  %v911_v1 = vor.u32 %v910_v49, %v909_v63  ;;  %v137_v10 = vsub.f32 %v128_v0, %v2724_v29  ;;  %v917_v48 = vor.u32 %v916_v18, %v915_v22 }
  0xcc   :  { %v3408_v54 = vpop.eup %2626  ;;  %v437_v46 = vclz %v2427_v20  ;;  %vm921_vm4 = vcmp.lt.s32.totalorder %v902_v12, 1  ;;  %v914_v17 = vor.u32 %v913_v53, %v912_v3  ;;  %v920_v24 = vor.u32 %v919_v16, %v918_v58 }
  0xcd   :  { %v3412_v55 = vpop.eup %2628  ;;  %v885_v39 = vxor.u32 2147483648, %v3408_v54  ;;  %vm922_vm5 = vcmp.lt.s32.totalorder %v902_v12, 2  ;;  %vm371_vm7 = vcmp.lt.s32.totalorder %v3242_v6, 0  ;;  %vm923_vm10 = vcmp.lt.s32.totalorder %v902_v12, 3 }
  0xce   :  { %v882_v31 = vxor.u32 2147483648, %v3412_v55  ;;  %v2428_v29 = vadd.s32 4294967294, %v437_v46  ;;  %vm924_vm11 = vcmp.lt.s32.totalorder %v902_v12, 4  ;;  %v925_v63 = vsel %vm921_vm4, %v905_v42, %v908_v13 }
  0xcf   :  { %v886_v19 = vsel %vm884_vm3, %v885_v39, %v3412_v55  ;;  %v926_v0 = vsel %vm924_vm11, %v914_v17, 2102212464  ;;  %v929_v26 = vsel %vm921_vm4, %v908_v13, %v911_v1  ;;  %v930_v3 = vsel %vm924_vm11, %v917_v48, 920167782 }
  0xd0   :  { %v883_v43 = vsel %vm881_vm1, %v3408_v54, %v882_v31  ;;  %vm2429_vm12 = vcmp.lt.s32.totalorder %v2428_v29, 0  ;;  %v927_v46 = vsel %vm923_vm10, %v911_v1, %v926_v0  ;;  %v931_v53 = vsel %vm923_vm10, %v914_v17, %v930_v3 }
  0xd1   :  { %v887_v45 = vsel %vm880_vm14, %v883_v43, %v886_v19  ;;  %v440_v49 = vsel %vm2429_vm12, 0, %v2428_v29  ;;  %v937_v18 = vshll.u32 %v897_v2, 8  ;;  %v455_v16 = vsub.s32 4, %v3376_v56 }
  0xd2   :  { %v3436_v22 = vsel %vm877_vm2, nan, %v887_v45  ;;  %v441_v58 = vsub.s32 32, %v440_v49  ;;  %v442_v20 = vshll.u32 %v3390_v11, %v440_v49  ;;  %v445_v9 = vsub.s32 4294967266, %v440_v49 }
  0xd3   :  { %1855 = vperm.xlu1 %2575, %v3436_v22   ;;  %v928_v42 = vsel %vm922_vm5, %v925_v63, %v927_v46  ;;  %v932_v13 = vsel %vm922_vm5, %v929_v26, %v931_v53  ;;  %v933_v19 = vsel %vm921_vm4, %v911_v1, %v914_v17  ;;  %v934_v43 = vsel %vm924_vm11, %v920_v24, 1326507024 }
  0xd4   :  { %v443_v29 = vshrl.u32 %v425_v4, %v441_v58  ;;  %v446_v0 = vadd.s32 127, %v445_v9  ;;  %v935_v2 = vsel %vm923_vm10, %v917_v48, %v934_v43  ;;  %v148_v45 = vmul.f32 %v2726_v32, %v137_v10 }
  0xd5   :  { %v936_v3 = vsel %vm922_vm5, %v933_v19, %v935_v2  ;;  %v3449_v11 = vmul.u32.u64.low %v937_v18, %v932_v13  ;;  %v3450_v49 = vmul.u32.u64.high %v937_v18, %v932_v13, %v3449_v11  ;;  %v3455_v63 = vsel %vm669_vm15, nan, %v3386_v15 }
  0xd6   :  { %v444_v26 = vor.u32 %v443_v29, %v442_v20  ;;  %v447_v1 = vshll.u32 %v446_v0, 23  ;;  %v3457_v17 = vmul.u32.u64.low %v937_v18, %v936_v3  ;;  %v3458_v24 = vmul.u32.u64.high %v937_v18, %v936_v3, %v3457_v17 }
  0xd7   :  { %v456_v48 = vsel %vm371_vm7, %v455_v16, %v3376_v56  ;;  %v3463_v32 = vmul.f32 3.1415927, %v148_v45  ;;  %v944_v10 = vmul.u32 %v937_v18, %v928_v42  ;;  %vm3467_vm9 = vcmp.le.f32.partialorder %v369_v14, 0.7853982 }
  0xd8   :  { %v448_v12 = vor.u32 4788187, %v447_v1  ;;  %v451_v4 = vcvt.s32.f32 %v444_v26  ;;  %v947_v15 = vadd.s32 1, %v3450_v49  ;;  %v3475_v58 = vsel %vm3467_vm9, 0, %v456_v48 }
  0xd9   :  { %v476_v46 = vand.u32 2139095040, %v3463_v32  ;;  %vm946_vm15 = vc.u32 %v3458_v24, %v3449_v11  ;;  %v462_v14 = vadd.s32 3, %v3475_v58  ;;  %v473_v3 = vand.u32 2147483647, %v3463_v32 }
  0xda   :  { %v449_v53 = vand.u32 2147483647, %v448_v12  ;;  %v948_v56 = vsel %vm946_vm15, %v947_v15, %v3450_v49  ;;  %vm461_vm4 = vweird.f32 %v3242_v6 }
  0xdb   :  { %v477_v18 = vshrl.u32 %v476_v46, 23  ;;  %v949_v9 = vadd.s32 %v948_v56, %v944_v10  ;;  %v3487_v2 = vand.u32 3, %v462_v14  ;;  %v480_v10 = vand.u32 8388607, %v473_v3 }
  0xdc   :  { %v452_v20 = vmul.f32 %v451_v4, %v449_v53 }
  0xdd   :  { %v2430_v16 = vadd.s32 4294967169, %v477_v18  ;;  %v950_v13 = vadd.s32 536870912, %v949_v9  ;;  %vm465_vm14 = vcmp.eq.s32.totalorder %v3487_v2, 0  ;;  %vm468_vm1 = vcmp.eq.s32.totalorder %v3487_v2, 2 }
  0xde   :  { %v453_v42 = vxor.u32 2147483648, %v452_v20  ;;  %vm464_vm3 = vcmp.lt.s32.totalorder %v3487_v2, 2 }
  0xdf   :  { %v483_v19 = vadd.s32 1, %v2430_v16  ;;  %v3482_v29 = vshrl.u32 %v950_v13, 30 }
  0xe0   :  { %v454_v43 = vsel %vm371_vm7, %v453_v42, %v452_v20  ;;  %v945_v42 = vadd.s32 %v3449_v11, %v3458_v24 }
  0xe1   :  { %v457_v0 = vsel %vm3467_vm9, %v3242_v6, %v454_v43  ;;  %vm484_vm13 = vcmp.gt.s32.totalorder %v483_v19, 0  ;;  %v952_v45 = vshll.u32 %v3482_v29, 30 }
  0xe2   :  { %2630 = vcosq.f32 %v457_v0  ;;  %v485_v49 = vsel %vm484_vm13, %v483_v19, 0 }
  0xe3   :  { %2632 = vsinq.f32 %v457_v0  ;;  %v487_v26 = vand.u32 31, %v485_v49  ;;  %v3491_v1 = vsub.s32 %v949_v9, %v952_v45  ;;  %v486_v8 = vshrl.u32 %v485_v49, 5 }
  0xe4   :  { %v1704_v45 = vand.u32 3, %v3344_v50 }
  0xe5   :  { %v488_v17 = vsub.s32 32, %v487_v26  ;;  %v490_v48 = vshll.u32 %v2658_v27, %v487_v26  ;;  %v493_v12 = vshll.u32 %v2659_v30, %v487_v26  ;;  %v955_v4 = vsub.s32 0, %v3491_v1 }
  0xe6   :  { %v496_v15 = vshll.u32 %v2660_v33, %v487_v26  ;;  %v499_v18 = vshll.u32 %v2661_v35, %v487_v26  ;;  %v502_v16 = vshll.u32 %v2662_v37, %v487_v26  ;;  %vm505_vm5 = vcmp.lt.s32.totalorder %v486_v8, 1 }
  0xe7   :  { %v491_v46 = vshrl.u32 %v2659_v30, %v488_v17  ;;  %v494_v53 = vshrl.u32 %v2660_v33, %v488_v17  ;;  %v497_v56 = vshrl.u32 %v2661_v35, %v488_v17  ;;  %v2447_v20 = vmin.u32 %v955_v4, %v3491_v1 }
  0xe8   :  { %v489_v9 = vshrl.u32 %v2658_v27, %v488_v17  ;;  %v500_v14 = vshrl.u32 %v2662_v37, %v488_v17  ;;  %v503_v30 = vshrl.u32 %v2663_v44, %v488_v17  ;;  %v481_v33 = vor.u32 8388608, %v480_v10 }
  0xe9   :  { %v492_v13 = vor.u32 %v491_v46, %v490_v48  ;;  %v495_v19 = vor.u32 %v494_v53, %v493_v12  ;;  %v957_v43 = vclz %v2447_v20  ;;  %v498_v0 = vor.u32 %v497_v56, %v496_v15 }
  0xea   :  { %v501_v35 = vor.u32 %v500_v14, %v499_v18  ;;  %v504_v49 = vor.u32 %v503_v30, %v502_v16  ;;  %vm506_vm7 = vcmp.lt.s32.totalorder %v486_v8, 2  ;;  %vm507_vm10 = vcmp.lt.s32.totalorder %v486_v8, 3 }
  0xeb   :  { %v2448_v4 = vadd.s32 4294967294, %v957_v43  ;;  %vm508_vm11 = vcmp.lt.s32.totalorder %v486_v8, 4  ;;  %v509_v37 = vsel %vm505_vm5, %v489_v9, %v492_v13  ;;  %v513_v44 = vsel %vm505_vm5, %v492_v13, %v495_v19 }
  0xec   :  { %v2631_v27 = vpop.eup %2630  ;;  %v510_v26 = vsel %vm508_vm11, %v498_v0, 2102212464  ;;  %v514_v17 = vsel %vm508_vm11, %v501_v35, 920167782  ;;  %v521_v53 = vshll.u32 %v481_v33, 8  ;;  %v517_v13 = vsel %vm505_vm5, %v495_v19, %v498_v0 }
  0xed   :  { %v2633_v11 = vpop.eup %2632  ;;  %v469_v24 = vxor.u32 2147483648, %v2631_v27  ;;  %vm2449_vm12 = vcmp.lt.s32.totalorder %v2448_v4, 0  ;;  %v511_v50 = vsel %vm507_vm10, %v495_v19, %v510_v26  ;;  %v515_v12 = vsel %vm507_vm10, %v498_v0, %v514_v17 }
  0xee   :  { %v466_v48 = vxor.u32 2147483648, %v2633_v11  ;;  %v960_v15 = vsel %vm2449_vm12, 0, %v2448_v4  ;;  %v516_v46 = vsel %vm506_vm7, %v513_v44, %v515_v12  ;;  %v512_v16 = vsel %vm506_vm7, %v509_v37, %v511_v50 }
  0xef   :  { %v470_v10 = vsel %vm468_vm1, %v469_v24, %v2633_v11  ;;  %v961_v18 = vsub.s32 32, %v960_v15  ;;  %v962_v20 = vshll.u32 %v3491_v1, %v960_v15  ;;  %v965_v9 = vsub.s32 4294967266, %v960_v15 }
  0xf0   :  { %v467_v56 = vsel %vm465_vm14, %v2631_v27, %v466_v48  ;;  %v518_v30 = vsel %vm508_vm11, %v504_v49, 1326507024  ;;  %v3538_v2 = vmul.u32.u64.low %v521_v53, %v516_v46  ;;  %v3539_v44 = vmul.u32.u64.high %v521_v53, %v516_v46, %v3538_v2 }
  0xf1   :  { %v471_v14 = vsel %vm464_vm3, %v467_v56, %v470_v10  ;;  %v963_v33 = vshrl.u32 %v945_v42, %v961_v18  ;;  %v966_v4 = vadd.s32 127, %v965_v9  ;;  %v519_v26 = vsel %vm507_vm10, %v501_v35, %v518_v30 }
  0xf2   :  { %v3533_v43 = vsel %vm461_vm4, nan, %v471_v14  ;;  %v520_v1 = vsel %vm506_vm7, %v517_v13, %v519_v26  ;;  %vm1705_vm9 = vcmp.lt.s32.totalorder %v1704_v45, 2  ;;  %v528_v17 = vmul.u32 %v521_v53, %v512_v16 }
  0xf3   :  { %1835 = vperm.xlu0 %2574, %v3533_v43   ;;  %v964_v19 = vor.u32 %v963_v33, %v962_v20  ;;  %v967_v0 = vshll.u32 %v966_v4, 23  ;;  %v3542_v49 = vmul.u32.u64.low %v521_v53, %v520_v1  ;;  %v3543_v37 = vmul.u32.u64.high %v521_v53, %v520_v1, %v3542_v49 }
  0xf4   :  { %vm1706_vm15 = vcmp.eq.s32.totalorder %v1704_v45, 0  ;;  %vm1709_vm13 = vcmp.eq.s32.totalorder %v1704_v45, 2  ;;  %v1292_v42 = vand.u32 3, %v3475_v58  ;;  %v975_v10 = vsub.s32 4, %v3482_v29 }
  0xf5   :  { %v968_v35 = vor.u32 4788187, %v967_v0  ;;  %v971_v50 = vcvt.s32.f32 %v964_v19  ;;  %v1708_v8 = vsel %vm1706_vm15, %v3408_v54, %v882_v31  ;;  %v1711_v12 = vsel %vm1709_vm13, %v885_v39, %v3412_v55 }
  0xf6   :  { %v531_v15 = vadd.s32 1, %v3539_v44  ;;  %v1712_v46 = vsel %vm1705_vm9, %v1708_v8, %v1711_v12  ;;  %vm1294_vm14 = vcmp.eq.s32.totalorder %v1292_v42, 0  ;;  %vm530_vm1 = vc.u32 %v3543_v37, %v3538_v2 }
  0xf7   :  { %v969_v53 = vand.u32 2147483647, %v968_v35  ;;  %v3559_v58 = vsel %vm877_vm2, nan, %v1712_v46  ;;  %vm1293_vm3 = vcmp.lt.s32.totalorder %v1292_v42, 2  ;;  %v1296_v54 = vsel %vm1294_vm14, %v2631_v27, %v466_v48 }
  0xf8   :  { %v532_v31 = vsel %vm530_vm1, %v531_v15, %v3539_v44  ;;  %vm1297_vm5 = vcmp.eq.s32.totalorder %v1292_v42, 2  ;;  %vm890_vm7 = vcmp.le.f32.partialorder %v889_v25, 0.7853982  ;;  %vm891_vm10 = vcmp.lt.s32.totalorder %v3305_v57, 0 }
  0xf9   :  { %v972_v55 = vmul.f32 %v971_v50, %v969_v53  ;;  %v533_v39 = vadd.s32 %v532_v31, %v528_v17  ;;  %v1299_v56 = vsel %vm1297_vm5, %v469_v24, %v2633_v11  ;;  %v976_v20 = vsel %vm891_vm10, %v975_v10, %v3482_v29 }
  0xfa   :  { %v1300_v45 = vsel %vm1293_vm3, %v1296_v54, %v1299_v56  ;;  %v978_v11 = vsel %vm890_vm7, 0, %v976_v20  ;;  %v1601_v29 = vand.u32 3, %v3109_v28  ;;  %vm981_vm2 = vweird.f32 %v3305_v57 }
  0xfb   :  { %v973_v18 = vxor.u32 2147483648, %v972_v55  ;;  %v534_v38 = vadd.s32 536870912, %v533_v39  ;;  %v3568_v9 = vsel %vm461_vm4, nan, %v1300_v45  ;;  %v982_v24 = vadd.s32 3, %v978_v11 }
  0xfc   :  { %vm1602_vm4 = vcmp.lt.s32.totalorder %v1601_v29, 2  ;;  %v1807_v4 = vand.u32 3, %v978_v11  ;;  %vm1603_vm12 = vcmp.eq.s32.totalorder %v1601_v29, 0  ;;  %vm1606_vm9 = vcmp.eq.s32.totalorder %v1601_v29, 2 }
  0xfd   :  { %v974_v14 = vsel %vm891_vm10, %v973_v18, %v972_v55  ;;  %v3570_v27 = vshrl.u32 %v534_v38, 30  ;;  %v983_v30 = vand.u32 3, %v982_v24  ;;  %v529_v28 = vadd.s32 %v3538_v2, %v3543_v37 }
  0xfe   :  { %v977_v48 = vsel %vm890_vm7, %v3305_v57, %v974_v14  ;;  %vm1812_vm14 = vcmp.eq.s32.totalorder %v1807_v4, 2  ;;  %vm1809_vm3 = vcmp.eq.s32.totalorder %v1807_v4, 0  ;;  %vm1808_vm5 = vcmp.lt.s32.totalorder %v1807_v4, 2 }
  0xff   :  { %2634 = vcosq.f32 %v977_v48  ;;  %v536_v25 = vshll.u32 %v3570_v27, 30  ;;  %vm988_vm11 = vcmp.eq.s32.totalorder %v983_v30, 2  ;;  %vm984_vm15 = vcmp.lt.s32.totalorder %v983_v30, 2 }
 0x100   :  { %2636 = vsinq.f32 %v977_v48  ;;  %vm985_vm13 = vcmp.eq.s32.totalorder %v983_v30, 0  ;;  %v3910_v15 = vxor.u32 2147483648, %v3223_v36  ;;  %v3911_v2 = vxor.u32 2147483648, %v3216_v52 }
 0x101   :  { %v537_v16 = vsub.s32 %v533_v39, %v536_v25  ;;  %v559_v14 = vsub.s32 4, %v3570_v27  ;;  %vm475_vm7 = vcmp.lt.s32.totalorder %v3463_v32, 0  ;;  %vm474_vm10 = vcmp.le.f32.partialorder %v473_v3, 0.7853982 }
 0x102   :  { %v1605_v46 = vsel %vm1603_vm12, %v3216_v52, %v3910_v15  ;;  %v1608_v37 = vsel %vm1606_vm9, %v3911_v2, %v3223_v36  ;;  %v1876_v29 = vmul.f32 %v3248_v5, %v3248_v5  ;;  %v1086_v3 = vand.u32 3, %v2981_v34 }
 0x103   :  { %v539_v13 = vsub.s32 0, %v537_v16  ;;  %v1609_v20 = vsel %vm1602_vm4, %v1605_v46, %v1608_v37  ;;  %v560_v25 = vsel %vm475_vm7, %v559_v14, %v3570_v27  ;;  %v3913_v34 = vxor.u32 2147483648, %v3118_v41 }
 0x104   :  { %v1610_v48 = vsel %vm773_vm8, nan, %v1609_v20  ;;  %vm1088_vm8 = vcmp.eq.s32.totalorder %v1086_v3, 0  ;;  %vm1087_vm4 = vcmp.lt.s32.totalorder %v1086_v3, 2  ;;  %v1943_v2 = vmul.f32 %v1876_v29, %v1876_v29 }
 0x105   :  { %v2431_v33 = vmin.u32 %v539_v13, %v537_v16  ;;  %v562_v13 = vsel %vm474_vm10, 0, %v560_v25  ;;  %v1873_v51 = vmul.f32 %v3533_v43, %v3533_v43 }
 0x106   :  { %v566_v7 = vadd.s32 3, %v562_v13  ;;  %v1395_v27 = vand.u32 3, %v562_v13 }
 0x107   :  { %v541_v6 = vclz %v2431_v33  ;;  %v1877_v33 = vmul.f32 %v3436_v22, %v3436_v22 }
 0x108   :  { %v567_v30 = vand.u32 3, %v566_v7  ;;  %vm1400_vm12 = vcmp.eq.s32.totalorder %v1395_v27, 2 }
 0x109   :  { %v2635_v26 = vpop.eup %2634  ;;  %v2432_v1 = vadd.s32 4294967294, %v541_v6  ;;  %v3912_v6 = vxor.u32 2147483648, %v3125_v61 }
 0x10a   :  { %v2637_v44 = vpop.eup %2636  ;;  %v989_v19 = vxor.u32 2147483648, %v2635_v26  ;;  %vm569_vm9 = vcmp.eq.s32.totalorder %v567_v30, 0 }
 0x10b   :  { %v986_v0 = vxor.u32 2147483648, %v2637_v44  ;;  %vm2433_vm1 = vcmp.lt.s32.totalorder %v2432_v1, 0  ;;  %v1090_v5 = vsel %vm1088_vm8, %v3118_v41, %v3912_v6 }
 0x10c   :  { %v990_v49 = vsel %vm988_vm11, %v989_v19, %v2637_v44  ;;  %v544_v17 = vsel %vm2433_vm1, 0, %v2432_v1  ;;  %v1814_v42 = vsel %vm1812_vm14, %v989_v19, %v2637_v44  ;;  %vm572_vm11 = vcmp.eq.s32.totalorder %v567_v30, 2 }
 0x10d   :  { %v987_v35 = vsel %vm985_vm13, %v2635_v26, %v986_v0  ;;  %v545_v50 = vsub.s32 32, %v544_v17  ;;  %v546_v8 = vshll.u32 %v537_v16, %v544_v17  ;;  %v549_v12 = vsub.s32 4294967266, %v544_v17 }
 0x10e   :  { %v991_v10 = vsel %vm984_vm15, %v987_v35, %v990_v49  ;;  %v1811_v53 = vsel %vm1809_vm3, %v2635_v26, %v986_v0  ;;  %vm1397_vm15 = vcmp.eq.s32.totalorder %v1395_v27, 0  ;;  %vm565_vm13 = vweird.f32 %v3463_v32 }
 0x10f   :  { %v992_v31 = vsel %vm981_vm2, nan, %v991_v10  ;;  %v547_v54 = vshrl.u32 %v529_v28, %v545_v50  ;;  %v550_v55 = vadd.s32 127, %v549_v12  ;;  %v1815_v39 = vsel %vm1808_vm5, %v1811_v53, %v1814_v42 }
 0x110   :  { %1860 = vperm.xlu1 %2575, %v992_v31   ;;  %v3591_v56 = vsel %vm981_vm2, nan, %v1815_v39  ;;  %vm1091_vm2 = vcmp.eq.s32.totalorder %v1086_v3, 2  ;;  %v1878_v1 = vmul.f32 %v992_v31, %v992_v31  ;;  %vm568_vm14 = vcmp.lt.s32.totalorder %v567_v30, 2  ;;  %v3644_v3 = vpop.permute.xlu1 %1830  ;;  %v2262_v30 = vld [vmem:[%s3890_s2] sm:$0xff] }
 0x111   :  { %v548_v45 = vor.u32 %v547_v54, %v546_v8  ;;  %v551_v18 = vshll.u32 %v550_v55, 23  ;;  %v1093_v4 = vsel %vm1091_vm2, %v3913_v34, %v3125_v61  ;;  %vm1396_vm1 = vcmp.lt.s32.totalorder %v1395_v27, 2  ;;  %v2263_v27 = vld [vmem:[%s3890_s2 + $0x8] sm:$0xff] }
 0x112   :  { %v1094_v41 = vsel %vm1087_vm4, %v1090_v5, %v1093_v4  ;;  %v3914_v35 = vxor.u32 2147483648, %v3046_v23  ;;  %v3915_v8 = vxor.u32 2147483648, %v3038_v21  ;;  %v1944_v53 = vmul.f32 %v1877_v33, %v1877_v33 }
 0x113   :  { %v552_v38 = vor.u32 4788187, %v551_v18  ;;  %v555_v52 = vcvt.s32.f32 %v548_v45  ;;  %v1095_v15 = vsel %vm253_vm0, nan, %v1094_v41  ;;  %v2010_v31 = vmul.f32 %v1943_v2, %v1943_v2 }
 0x114   :  { %2228 = vperm.xlu1 %2575, %v3455_v63   ;;  %v1875_v63 = vmul.f32 %v3359_v47, %v3359_v47  ;;  %v1189_v47 = vand.u32 3, %v2935_v40  ;;  %v2011_v54 = vmul.f32 %v1944_v53, %v1944_v53  ;;  %v1940_v18 = vmul.f32 %v1873_v51, %v1873_v51 }
 0x115   :  { %v553_v36 = vand.u32 2147483647, %v552_v38 }
 0x116   :  { %vm1191_vm3 = vcmp.eq.s32.totalorder %v1189_v47, 0  ;;  %vm1194_vm5 = vcmp.eq.s32.totalorder %v1189_v47, 2  ;;  %v1942_v49 = vmul.f32 %v1875_v63, %v1875_v63  ;;  %v2078_v20 = vmul.f32 %v2011_v54, %v2011_v54 }
 0x117   :  { %v556_v11 = vmul.f32 %v555_v52, %v553_v36  ;;  %v1193_v50 = vsel %vm1191_vm3, %v3038_v21, %v3914_v35  ;;  %v1196_v12 = vsel %vm1194_vm5, %v3915_v8, %v3046_v23  ;;  %v1945_v21 = vmul.f32 %v1878_v1, %v1878_v1 }
 0x118   :  { %2233 = vperm.xlu1 %2575, %v1610_v48   ;;  %v1871_v23 = vmul.f32 %v3157_v60, %v3157_v60  ;;  %v2009_v59 = vmul.f32 %v1942_v49, %v1942_v49 }
 0x119   :  { %v557_v57 = vxor.u32 2147483648, %v556_v11  ;;  %v2012_v60 = vmul.f32 %v1945_v21, %v1945_v21 }
 0x11a   :  { %v1938_v39 = vmul.f32 %v1871_v23, %v1871_v23 }
 0x11b   :  { %v558_v24 = vsel %vm475_vm7, %v557_v57, %v556_v11  ;;  %vm1190_vm7 = vcmp.lt.s32.totalorder %v1189_v47, 2  ;;  %v2079_v38 = vmul.f32 %v2012_v60, %v2012_v60  ;;  %v2007_v11 = vmul.f32 %v1940_v18, %v1940_v18 }
 0x11c   :  { %v561_v16 = vsel %vm474_vm10, %v3463_v32, %v558_v24  ;;  %2238 = vperm.xlu1 %2575, %v3559_v58   ;;  %v1197_v46 = vsel %vm1190_vm7, %v1193_v50, %v1196_v12  ;;  %v1872_v32 = vmul.f32 %v3082_v62, %v3082_v62  ;;  %v2077_v62 = vmul.f32 %v2010_v31, %v2010_v31 }
 0x11d   :  { %2638 = vcosq.f32 %v561_v16  ;;  %v1198_v37 = vsel %vm357_vm6, nan, %v1197_v46  ;;  %v2005_v52 = vmul.f32 %v1938_v39, %v1938_v39  ;;  %v2145_v57 = vmul.f32 %v2078_v20, %v2078_v20 }
 0x11e   :  { %2640 = vsinq.f32 %v561_v16  ;;  %v1939_v45 = vmul.f32 %v1872_v32, %v1872_v32  ;;  %v2144_v48 = vmul.f32 %v2077_v62, %v2077_v62  ;;  %v2146_v24 = vmul.f32 %v2079_v38, %v2079_v38 }
 0x11f   :  { %v2074_v13 = vmul.f32 %v2007_v11, %v2007_v11  ;;  %v2522_v47 = vpack.c.bf16 %v2263_v27, %v2262_v30  ;;  %v1851_v34 = vpop.permute.xlu1 %1850 }
 0x120   :  { %1904 = vperm.xlu1 %2575, %v1875_v63   ;;  %v2006_v14 = vmul.f32 %v1939_v45, %v1939_v45  ;;  %v2072_v63 = vmul.f32 %v2005_v52, %v2005_v52 }
 0x121   :  { %2523 = vmatprep.subr.bf16.mxu0 %v2522_v47  ;;  %2530 = vmatprep.subr.bf16.mxu1 %v2522_v47  ;;  %v2141_v6 = vmul.f32 %v2074_v13, %v2074_v13 }
 0x122   :  { %v2073_v16 = vmul.f32 %v2006_v14, %v2006_v14  ;;  %2525 = vmatpush3.bf16.msra.mxu0 %v2522_v47  ;;  %2532 = vmatpush3.bf16.msra.mxu1 %v2522_v47 }
 0x124   :  { %1909 = vperm.xlu1 %2575, %v1876_v29   ;;  %v2139_v29 = vmul.f32 %v2072_v63, %v2072_v63 }
 0x127   :  { %v2639_v58 = vpop.eup %2638 }
 0x128   :  { %v2641_v26 = vpop.eup %2640  ;;  %v573_v22 = vxor.u32 2147483648, %v2639_v58  ;;  %1914 = vperm.xlu1 %2575, %v1877_v33   ;;  %v2140_v33 = vmul.f32 %v2073_v16, %v2073_v16 }
 0x129   :  { %v570_v40 = vxor.u32 2147483648, %v2641_v26 }
 0x12a   :  { %v574_v44 = vsel %vm572_vm11, %v573_v22, %v2641_v26  ;;  %v1402_v19 = vsel %vm1400_vm12, %v573_v22, %v2641_v26  ;;  %vm2266_vm12 = vcmask 261120  }
 0x12b   :  { %v571_v0 = vsel %vm569_vm9, %v2639_v58, %v570_v40  ;;  %v1399_v61 = vsel %vm1397_vm15, %v2639_v58, %v570_v40  ;;  %v2265_v58 = vld [vmem:[%s3890_s2 + $0x18] sm:$0xff] }
 0x12c   :  { %v575_v28 = vsel %vm568_vm14, %v571_v0, %v574_v44  ;;  %1919 = vperm.xlu1 %2575, %v1878_v1   ;;  %v1403_v17 = vsel %vm1396_vm1, %v1399_v61, %v1402_v19  ;;  %v3663_v44 = vpop.permute.xlu0 %1825 }
 0x12d   :  { %v576_v42 = vsel %vm565_vm13, nan, %v575_v28  ;;  %v3630_v10 = vsel %vm565_vm13, nan, %v1403_v17 }
 0x12e   :  { %1840 = vperm.xlu0 %2574, %v576_v42   ;;  %v1874_v55 = vmul.f32 %v576_v42, %v576_v42 }
 0x130   :  { %1971 = vperm.xlu1 %2575, %v1942_v49   ;;  %v1941_v43 = vmul.f32 %v1874_v55, %v1874_v55 }
 0x132   :  { %2208 = vperm.xlu0 %2574, %v1095_v15   ;;  %v2008_v25 = vmul.f32 %v1941_v43, %v1941_v43  ;;  %v1817_v15 = vlaneseq }
 0x134   :  { %1976 = vperm.xlu1 %2575, %v1943_v2   ;;  %v2075_v7 = vmul.f32 %v2008_v25, %v2008_v25 }
 0x136   :  { %2213 = vperm.xlu0 %2574, %v1198_v37   ;;  %v2142_v4 = vmul.f32 %v2075_v7, %v2075_v7  ;;  %v3677_v37 = vand.u32 127, %v1817_v15 }
 0x138   :  { %1981 = vperm.xlu1 %2575, %v1944_v53   ;;  %vm1819_vm6 = vcmp.lt.s32.totalorder %v3677_v37, 31 }
 0x13a   :  { %2218 = vperm.xlu0 %2574, %v3568_v9   ;;  %v2076_v9 = vmul.f32 %v2009_v59, %v2009_v59 }
 0x13c   :  { %1986 = vperm.xlu1 %2575, %v1945_v21   ;;  %v2143_v36 = vmul.f32 %v2076_v9, %v2076_v9 }
 0x13d   :  { %v1846_v41 = vpop.permute.xlu0 %1845 }
 0x13e   :  { %1884 = vperm.xlu0 %2574, %v1871_v23  }
 0x140   :  { %2038 = vperm.xlu1 %2575, %v2009_v59   ;;  %v1820_v59 = vsel %vm1819_vm6, %v3677_v37, 32 }
 0x142   :  { %1889 = vperm.xlu0 %2574, %v1872_v32  }
 0x144   :  { %2043 = vperm.xlu1 %2575, %v2010_v31  }
 0x146   :  { %1894 = vperm.xlu0 %2574, %v1873_v51   ;;  %v1879_v51 = vshra.s32 %v1820_v59, 1 }
 0x148   :  { %2048 = vperm.xlu1 %2575, %v2011_v54   ;;  %v1821_v54 = vand.u32 1, %v1820_v59 }
 0x14a   :  { %1899 = vperm.xlu0 %2574, %v1874_v55   ;;  %vm3693_vm0 = vcmp.eq.s32.totalorder %v1821_v54, 1 }
 0x14c   :  { %2053 = vperm.xlu1 %2575, %v2012_v60  }
 0x14e   :  { %1951 = vperm.xlu0 %2574, %v1938_v39   ;;  %v3691_v39 = vand.u32 1, %v1879_v51 }
 0x150   :  { %2105 = vperm.xlu1 %2575, %v2076_v9   ;;  %vm1881_vm10 = vcmp.eq.s32.totalorder %v3691_v39, 1 }
 0x152   :  { %1956 = vperm.xlu0 %2574, %v1939_v45   ;;  %v1856_v26 = vpop.permute.xlu1 %1855  ;;  %v1946_v45 = vshra.s32 %v1820_v59, 2 }
 0x154   :  { %2110 = vperm.xlu1 %2575, %v2077_v62   ;;  %v1867_v62 = vsel %vm3693_vm0, %v1846_v41, 1.0 }
 0x156   :  { %1961 = vperm.xlu0 %2574, %v1940_v18  }
 0x158   :  { %2115 = vperm.xlu1 %2575, %v2078_v20  }
 0x15a   :  { %1966 = vperm.xlu0 %2574, %v1941_v43  }
 0x15c   :  { %2120 = vperm.xlu1 %2575, %v2079_v38   ;;  %v3702_v38 = vand.u32 1, %v1946_v45 }
 0x15e   :  { %2018 = vperm.xlu0 %2574, %v2005_v52   ;;  %v1868_v52 = vsel %vm3693_vm0, %v1851_v34, 1.0  ;;  %vm1948_vm8 = vcmp.eq.s32.totalorder %v3702_v38, 1 }
 0x160   :  { %2172 = vperm.xlu1 %2575, %v2143_v36   ;;  %v2013_v36 = vshra.s32 %v1820_v59, 3 }
 0x162   :  { %2023 = vperm.xlu0 %2574, %v2006_v14  }
 0x164   :  { %2177 = vperm.xlu1 %2575, %v2144_v48  }
 0x166   :  { %2028 = vperm.xlu0 %2574, %v2007_v11  }
 0x168   :  { %2182 = vperm.xlu1 %2575, %v2145_v57  }
 0x16a   :  { %2033 = vperm.xlu0 %2574, %v2008_v25  }
 0x16c   :  { %2187 = vperm.xlu1 %2575, %v2146_v24   ;;  %v1869_v24 = vsel %vm3693_vm0, %v1856_v26, 1.0 }
 0x16e   :  { %2085 = vperm.xlu0 %2574, %v2072_v63   ;;  %v3713_v63 = vand.u32 1, %v2013_v36 }
 0x170   :  { %2243 = vperm.xlu1 %2575, %v3591_v56   ;;  %v2264_v56 = vld [vmem:[%s3890_s2 + $0x10] sm:$0xff]  ;;  %vm2015_vm2 = vcmp.eq.s32.totalorder %v3713_v63, 1 }
 0x171   :  { %v2526_v5 = vpack.c.bf16 %v2265_v58, %v2264_v56 }
 0x172   :  { %2090 = vperm.xlu0 %2574, %v2073_v16   ;;  %v3667_v28 = vpop.permute.xlu0 %1835 }
 0x173   :  { %2527 = vmatprep.subr.bf16.mxu0 %v2526_v5  ;;  %2531 = vmatprep.subr.bf16.mxu1 %v2526_v5 }
 0x174   :  { %2529 = vmatpush3.bf16.msra.mxu0 %v2526_v5  ;;  %2533 = vmatpush3.bf16.msra.mxu1 %v2526_v5 }
 0x176   :  { %2095 = vperm.xlu0 %2574, %v2074_v13  }
 0x17a   :  { %2100 = vperm.xlu0 %2574, %v2075_v7  }
 0x17e   :  { %2152 = vperm.xlu0 %2574, %v2139_v29   ;;  %v2080_v29 = vshra.s32 %v1820_v59, 4 }
 0x182   :  { %2157 = vperm.xlu0 %2574, %v2140_v33  }
 0x186   :  { %2162 = vperm.xlu0 %2574, %v2141_v6   ;;  %v2147_v6 = vshra.s32 %v1820_v59, 5 }
 0x18a   :  { %2167 = vperm.xlu0 %2574, %v2142_v4   ;;  %v3726_v4 = vand.u32 1, %v2080_v29 }
 0x18c   :  { %vm2082_vm4 = vcmp.eq.s32.totalorder %v3726_v4, 1 }
 0x18e   :  { %2223 = vperm.xlu0 %2574, %v3630_v10  }
 0x18f   :  { %v1861_v1 = vpop.permute.xlu1 %1860 }
 0x190   :  { %v1870_v56 = vsel %vm3693_vm0, %v1861_v1, 1.0 }
 0x193   :  { %v3659_v22 = vpop.permute.xlu1 %2228 }
 0x197   :  { %v3661_v40 = vpop.permute.xlu1 %2233 }
 0x19b   :  { %v3665_v19 = vpop.permute.xlu1 %2238 }
 0x19f   :  { %v1905_v0 = vpop.permute.xlu1 %1904 }
 0x1a0   :  { %v1926_v20 = vmul.f32 %v1905_v0, %v1867_v62 }
 0x1a2   :  { %v1934_v11 = vsel %vm1881_vm10, %v1926_v20, %v1867_v62 }
 0x1a3   :  { %v1910_v61 = vpop.permute.xlu1 %1909 }
 0x1a4   :  { %v1927_v48 = vmul.f32 %v1910_v61, %v1868_v52 }
 0x1a6   :  { %v1935_v7 = vsel %vm1881_vm10, %v1927_v48, %v1868_v52 }
 0x1a7   :  { %v1915_v49 = vpop.permute.xlu1 %1914 }
 0x1a8   :  { %v1928_v13 = vmul.f32 %v1915_v49, %v1869_v24 }
 0x1aa   :  { %v1936_v34 = vsel %vm1881_vm10, %v1928_v13, %v1869_v24 }
 0x1ab   :  { %v1920_v17 = vpop.permute.xlu1 %1919 }
 0x1ac   :  { %v1929_v5 = vmul.f32 %v1920_v17, %v1870_v56 }
 0x1ad   :  { %v3669_v42 = vpop.permute.xlu0 %1840 }
 0x1ae   :  { %v1937_v17 = vsel %vm1881_vm10, %v1929_v5, %v1870_v56  ;;  %v1863_v56 = vsel %vm3693_vm0, %v3663_v44, 1.0  ;;  %v1864_v44 = vsel %vm3693_vm0, %v3644_v3, 1.0  ;;  %v1865_v3 = vsel %vm3693_vm0, %v3667_v28, 1.0 }
 0x1af   :  { %v1972_v35 = vpop.permute.xlu1 %1971  ;;  %v1866_v28 = vsel %vm3693_vm0, %v3669_v42, 1.0 }
 0x1b0   :  { %v1993_v57 = vmul.f32 %v1972_v35, %v1934_v11 }
 0x1b1   :  { %v3671_v50 = vpop.permute.xlu0 %2208 }
 0x1b2   :  { %v2001_v33 = vsel %vm1948_vm8, %v1993_v57, %v1934_v11 }
 0x1b3   :  { %v1977_v8 = vpop.permute.xlu1 %1976 }
 0x1b4   :  { %v1994_v30 = vmul.f32 %v1977_v8, %v1935_v7  ;;  %v3734_v8 = vand.u32 1, %v2147_v6 }
 0x1b5   :  { %v3673_v12 = vpop.permute.xlu0 %2213 }
 0x1b6   :  { %v2002_v41 = vsel %vm1948_vm8, %v1994_v30, %v1935_v7  ;;  %vm2149_vm11 = vcmp.eq.s32.totalorder %v3734_v8, 1 }
 0x1b7   :  { %v1982_v10 = vpop.permute.xlu1 %1981 }
 0x1b8   :  { %v1995_v26 = vmul.f32 %v1982_v10, %v1936_v34 }
 0x1b9   :  { %v3675_v46 = vpop.permute.xlu0 %2218 }
 0x1bb   :  { %v1987_v2 = vpop.permute.xlu1 %1986 }
 0x1bc   :  { %v1996_v15 = vmul.f32 %v1987_v2, %v1937_v17 }
 0x1bd   :  { %v3679_v53 = vpop.permute.xlu0 %1884 }
 0x1be   :  { %v2004_v2 = vsel %vm1948_vm8, %v1996_v15, %v1937_v17  ;;  %v1922_v5 = vmul.f32 %v3679_v53, %v1863_v56 }
 0x1bf   :  { %v2039_v21 = vpop.permute.xlu1 %2038 }
 0x1c0   :  { %v2060_v47 = vmul.f32 %v2039_v21, %v2001_v33  ;;  %v2003_v21 = vsel %vm1948_vm8, %v1995_v26, %v1936_v34 }
 0x1c1   :  { %v3682_v23 = vpop.permute.xlu0 %1889 }
 0x1c2   :  { %v2068_v1 = vsel %vm2015_vm2, %v2060_v47, %v2001_v33 }
 0x1c3   :  { %v2044_v32 = vpop.permute.xlu1 %2043 }
 0x1c4   :  { %v2061_v61 = vmul.f32 %v2044_v32, %v2002_v41 }
 0x1c5   :  { %v3687_v31 = vpop.permute.xlu0 %1894 }
 0x1c6   :  { %v2069_v32 = vsel %vm2015_vm2, %v2061_v61, %v2002_v41 }
 0x1c7   :  { %v2049_v55 = vpop.permute.xlu1 %2048 }
 0x1c8   :  { %v2062_v59 = vmul.f32 %v2049_v55, %v2003_v21 }
 0x1c9   :  { %v3689_v60 = vpop.permute.xlu0 %1899 }
 0x1ca   :  { %v2070_v36 = vsel %vm2015_vm2, %v2062_v59, %v2003_v21 }
 0x1cb   :  { %v2054_v18 = vpop.permute.xlu1 %2053 }
 0x1cc   :  { %v2063_v52 = vmul.f32 %v2054_v18, %v2004_v2 }
 0x1cd   :  { %v3700_v43 = vpop.permute.xlu0 %1951 }
 0x1ce   :  { %v2071_v18 = vsel %vm2015_vm2, %v2063_v52, %v2004_v2 }
 0x1cf   :  { %v2106_v14 = vpop.permute.xlu1 %2105 }
 0x1d0   :  { %v2127_v49 = vmul.f32 %v2106_v14, %v2068_v1 }
 0x1d1   :  { %v3708_v25 = vpop.permute.xlu0 %1956 }
 0x1d2   :  { %v2135_v45 = vsel %vm2082_vm4, %v2127_v49, %v2068_v1  ;;  %v1923_v49 = vmul.f32 %v3682_v23, %v1864_v44 }
 0x1d3   :  { %v2111_v16 = vpop.permute.xlu1 %2110 }
 0x1d4   :  { %v2128_v51 = vmul.f32 %v2111_v16, %v2069_v32  ;;  %v1931_v23 = vsel %vm1881_vm10, %v1923_v49, %v1864_v44 }
 0x1d5   :  { %v3717_v27 = vpop.permute.xlu0 %1961 }
 0x1d6   :  { %v2136_v48 = vsel %vm2082_vm4, %v2128_v51, %v2069_v32  ;;  %v1924_v32 = vmul.f32 %v3687_v31, %v1865_v3  ;;  %v1925_v31 = vmul.f32 %v3689_v60, %v1866_v28 }
 0x1d7   :  { %v2116_v58 = vpop.permute.xlu1 %2115 }
 0x1d8   :  { %v2129_v14 = vmul.f32 %v2116_v58, %v2070_v36  ;;  %v1932_v2 = vsel %vm1881_vm10, %v1924_v32, %v1865_v3  ;;  %v1933_v42 = vsel %vm1881_vm10, %v1925_v31, %v1866_v28 }
 0x1d9   :  { %v3728_v0 = vpop.permute.xlu0 %1966  ;;  %v1991_v52 = vmul.f32 %v3717_v27, %v1932_v2 }
 0x1da   :  { %v2137_v33 = vsel %vm2082_vm4, %v2129_v14, %v2070_v36  ;;  %v1992_v9 = vmul.f32 %v3728_v0, %v1933_v42 }
 0x1db   :  { %v2121_v35 = vpop.permute.xlu1 %2120  ;;  %v1999_v60 = vsel %vm1948_vm8, %v1991_v52, %v1932_v2 }
 0x1dc   :  { %v2130_v29 = vmul.f32 %v2121_v35, %v2071_v18  ;;  %v1930_v35 = vsel %vm1881_vm10, %v1922_v5, %v1863_v56 }
 0x1dd   :  { %v2019_v10 = vpop.permute.xlu0 %2018  ;;  %v1989_v17 = vmul.f32 %v3700_v43, %v1930_v35 }
 0x1de   :  { %v2138_v26 = vsel %vm2082_vm4, %v2130_v29, %v2071_v18 }
 0x1df   :  { %v2173_v54 = vpop.permute.xlu1 %2172  ;;  %v1997_v43 = vsel %vm1948_vm8, %v1989_v17, %v1930_v35 }
 0x1e0   :  { %v2194_v62 = vmul.f32 %v2173_v54, %v2135_v45  ;;  %v1990_v54 = vmul.f32 %v3708_v25, %v1931_v23 }
 0x1e1   :  { %v2024_v20 = vpop.permute.xlu0 %2023 }
 0x1e2   :  { %v2202_v55 = vsel %vm2149_vm11, %v2194_v62, %v2135_v45  ;;  %v2056_v45 = vmul.f32 %v2019_v10, %v1997_v43  ;;  %v1998_v25 = vsel %vm1948_vm8, %v1990_v54, %v1931_v23 }
 0x1e3   :  { %v2178_v11 = vpop.permute.xlu1 %2177  ;;  %v2250_v57 = vmul.f32 %v3659_v22, %v2202_v55  ;;  %v2057_v36 = vmul.f32 %v2024_v20, %v1998_v25 }
 0x1e4   :  { %v2195_v24 = vmul.f32 %v2178_v11, %v2136_v48 }
 0x1e5   :  { %v2029_v16 = vpop.permute.xlu0 %2028  ;;  %v2258_v13 = vsel %vm1819_vm6, %v2250_v57, %v2202_v55  ;;  %v2064_v55 = vsel %vm2015_vm2, %v2056_v45, %v1997_v43  ;;  %v2065_v27 = vsel %vm2015_vm2, %v2057_v36, %v1998_v25 }
 0x1e6   :  { %v2203_v7 = vsel %vm2149_vm11, %v2195_v24, %v2136_v48  ;;  %2516 = vmatprep.mubr.msk.f32.mxu1 %vm2266_vm12, %v2258_v13  ;;  %v2058_v48 = vmul.f32 %v2029_v16, %v1999_v60  ;;  %v2000_v13 = vsel %vm1948_vm8, %v1992_v9, %v1933_v42 }
 0x1e7   :  { %v2251_v30 = vmul.f32 %v3661_v40, %v2203_v7  ;;  %v2183_v22 = vpop.permute.xlu1 %2182 }
 0x1e8   :  { %v2196_v47 = vmul.f32 %v2183_v22, %v2137_v33  ;;  %v2066_v0 = vsel %vm2015_vm2, %v2058_v48, %v1999_v60 }
 0x1e9   :  { %v2034_v58 = vpop.permute.xlu0 %2033  ;;  %v2259_v6 = vsel %vm1819_vm6, %v2251_v30, %v2203_v7 }
 0x1ea   :  { %v2204_v34 = vsel %vm2149_vm11, %v2196_v47, %v2137_v33  ;;  %2517 = vmatmul.mubr.msk.f32.vlgmr.msra.gmra.mrb[0].mxu1 %vm2266_vm12, %v2259_v6  ;;  %v2059_v39 = vmul.f32 %v2034_v58, %v2000_v13 }
 0x1eb   :  { %v2252_v40 = vmul.f32 %v3665_v19, %v2204_v34  ;;  %v2188_v41 = vpop.permute.xlu1 %2187 }
 0x1ec   :  { %v2197_v61 = vmul.f32 %v2188_v41, %v2138_v26  ;;  %v2067_v38 = vsel %vm2015_vm2, %v2059_v39, %v2000_v13 }
 0x1ed   :  { %v2086_v1 = vpop.permute.xlu0 %2085  ;;  %v2260_v53 = vsel %vm1819_vm6, %v2252_v40, %v2204_v34 }
 0x1ee   :  { %2519 = vmatprep.mubr.msk.f32.mxu1 %vm2266_vm12, %v2260_v53  ;;  %v2205_v19 = vsel %vm2149_vm11, %v2197_v61, %v2138_v26  ;;  %v2123_v10 = vmul.f32 %v2086_v1, %v2064_v55 }
 0x1ef   :  { %v2244_v15 = vpop.permute.xlu1 %2243 }
 0x1f0   :  { %v2253_v21 = vmul.f32 %v2244_v15, %v2205_v19  ;;  %v2131_v20 = vsel %vm2082_vm4, %v2123_v10, %v2064_v55 }
 0x1f1   :  { %v2091_v59 = vpop.permute.xlu0 %2090 }
 0x1f2   :  { %v2261_v51 = vsel %vm1819_vm6, %v2253_v21, %v2205_v19  ;;  %v2124_v11 = vmul.f32 %v2091_v59, %v2065_v27 }
 0x1f3   :  { %2520 = vmatmul.mubr.msk.f32.gmra.mrb[2].mxu1 %vm2266_vm12, %v2261_v51 }
 0x1f4   :  { %v2132_v7 = vsel %vm2082_vm4, %v2124_v11, %v2065_v27 }
 0x1f5   :  { %v2096_v62 = vpop.permute.xlu0 %2095 }
 0x1f6   :  { %v2125_v16 = vmul.f32 %v2096_v62, %v2066_v0 }
 0x1f8   :  { %v2133_v6 = vsel %vm2082_vm4, %v2125_v16, %v2066_v0 }
 0x1f9   :  { %v2101_v14 = vpop.permute.xlu0 %2100 }
 0x1fa   :  { %v2126_v56 = vmul.f32 %v2101_v14, %v2067_v38 }
 0x1fc   :  { %v2134_v26 = vsel %vm2082_vm4, %v2126_v56, %v2067_v38 }
 0x1fd   :  { %v2153_v57 = vpop.permute.xlu0 %2152 }
 0x1fe   :  { %v2190_v24 = vmul.f32 %v2153_v57, %v2131_v20 }
 0x200   :  { %v2198_v18 = vsel %vm2149_vm11, %v2190_v24, %v2131_v20 }
 0x201   :  { %v2158_v29 = vpop.permute.xlu0 %2157  ;;  %v2246_v30 = vmul.f32 %v3671_v50, %v2198_v18 }
 0x202   :  { %v2191_v33 = vmul.f32 %v2158_v29, %v2132_v7 }
 0x203   :  { %v2254_v22 = vsel %vm1819_vm6, %v2246_v30, %v2198_v18 }
 0x204   :  { %v2199_v47 = vsel %vm2149_vm11, %v2191_v33, %v2132_v7  ;;  %2510 = vmatprep.mubr.msk.f32.mxu0 %vm2266_vm12, %v2254_v22 }
 0x205   :  { %v2247_v58 = vmul.f32 %v3673_v12, %v2199_v47  ;;  %v2163_v5 = vpop.permute.xlu0 %2162 }
 0x206   :  { %v2192_v50 = vmul.f32 %v2163_v5, %v2133_v6 }
 0x207   :  { %v2255_v34 = vsel %vm1819_vm6, %v2247_v58, %v2199_v47 }
 0x208   :  { %v2200_v63 = vsel %vm2149_vm11, %v2192_v50, %v2133_v6  ;;  %2511 = vmatmul.mubr.msk.f32.vlgmr.msra.gmra.mrb[0].mxu0 %vm2266_vm12, %v2255_v34 }
 0x209   :  { %v2248_v40 = vmul.f32 %v3675_v46, %v2200_v63  ;;  %v2168_v41 = vpop.permute.xlu0 %2167 }
 0x20a   :  { %v2193_v12 = vmul.f32 %v2168_v41, %v2134_v26 }
 0x20b   :  { %v2256_v61 = vsel %vm1819_vm6, %v2248_v40, %v2200_v63 }
 0x20c   :  { %2513 = vmatprep.mubr.msk.f32.mxu0 %vm2266_vm12, %v2256_v61  ;;  %v2201_v44 = vsel %vm2149_vm11, %v2193_v12, %v2134_v26 }
 0x20d   :  { %v2224_v1 = vpop.permute.xlu0 %2223 }
 0x20e   :  { %v2249_v53 = vmul.f32 %v2224_v1, %v2201_v44 }
 0x210   :  { %v2257_v49 = vsel %vm1819_vm6, %v2249_v53, %v2201_v44 }
 0x211   :  { %2514 = vmatmul.mubr.msk.f32.gmra.mrb[2].mxu0 %vm2266_vm12, %v2257_v49 }
 0x2bd   :  { %v2518_v46 = vpop.f32.mrb[0].mxu1 }
 0x2be   :  { %2401 = vst.msk [vmem:[%s3891_s3 + $0x28] sm:$0xff] %vm2266_vm12, %v2518_v46  ;;  %v2377_v4 = vpop.f32.mrb[1].mxu1 }
 0x2bf   :  { %2400 = vst.msk [vmem:[%s3891_s3 + $0x20] sm:$0xff] %vm2266_vm12, %v2377_v4 }
 0x2c6   :  { %v2521_v8 = vpop.f32.mrb[2].mxu1 }
 0x2c7   :  { %2403 = vst.msk [vmem:[%s3891_s3 + $0x38] sm:$0xff] %vm2266_vm12, %v2521_v8  ;;  %v2387_v37 = vpop.f32.mrb[3].mxu1 }
 0x2c8   :  { %2402 = vst.msk [vmem:[%s3891_s3 + $0x30] sm:$0xff] %vm2266_vm12, %v2387_v37 }
 0x2db   :  { %v2512_v35 = vpop.f32.mrb[0].mxu0 }
 0x2dc   :  { %2397 = vst.msk [vmem:[%s3891_s3 + $0x8] sm:$0xff] %vm2266_vm12, %v2512_v35  ;;  %v2357_v19 = vpop.f32.mrb[1].mxu0 }
 0x2dd   :  { %2396 = vst.msk [vmem:[%s3891_s3] sm:$0xff] %vm2266_vm12, %v2357_v19 }
 0x2e4   :  { %v2515_v17 = vpop.f32.mrb[2].mxu0 }
 0x2e5   :  { %2399 = vst.msk [vmem:[%s3891_s3 + $0x18] sm:$0xff] %vm2266_vm12, %v2515_v17  ;;  %v2367_v15 = vpop.f32.mrb[3].mxu0 }
 0x2e6   :  { %2398 = vst.msk [vmem:[%s3891_s3 + $0x10] sm:$0xff] %vm2266_vm12, %v2367_v15 }
 0x2e7   :  { %2408 = vsyncpa [#allocation3], 1 }

</bundles_post_ra>
